<compile_context>
chip_gen: v7x
topology: tpu7x:2x2x1
jax: 0.10.0
libtpu: 0.0.40
codegen_flags: <defaults>
</compile_context>

<pallas_src>
import math
from functools import partial

import jax
import jax.numpy as jnp
import numpy as np
from jax.experimental import pallas as pl
from jax.experimental.pallas import tpu as pltpu

EPS = 1e-6


def _gelu_tanh(x):
    c = math.sqrt(2.0 / math.pi)
    return 0.5 * x * (1.0 + jnp.tanh(c * (x + 0.044715 * x * x * x)))


def _round_up(x, m):
    return ((x + m - 1) // m) * m


# ---------------------------------------------------------------------------
# Hardware-aware budgets (v7x: 64 MiB VMEM / 2 TCs; v5e/v6e: 128 MiB / 1 TC)
# ---------------------------------------------------------------------------
def _tpu_budget():
    vmem_cap = 128 * 1024 * 1024
    cores = 1
    try:
        info = pltpu.get_tpu_info()
        vmem_cap = int(getattr(info, "vmem_capacity_bytes", vmem_cap) or vmem_cap)
        cores = int(getattr(info, "num_cores", 1) or 1)
    except Exception:
        pass
    if vmem_cap <= 64 * 1024 * 1024 or cores >= 2:
        # v7x-like: leave compiler headroom, keep >=2 parallel grid steps.
        return {"tile_budget": 28 << 20, "vmem_cap": 52 << 20, "min_grid": 2}
    # v5e / v6e: single TC, large VMEM -> big tiles, few grid steps.
    return {"tile_budget": 72 << 20, "vmem_cap": 100 << 20, "min_grid": 1}


def _step_bytes(rb, w, c3, cmid, cout_p, in_itm, out_itm, add_res):
    """Double-buffered, lane/sublane-padded per-grid-step VMEM estimate."""
    lane = lambda c: _round_up(max(c, 1), 128)
    sub = lambda r: _round_up(max(r, 1), 8)
    S = (rb + 2) * w
    L = rb * w
    b = 2 * sub(S) * lane(c3) * in_itm                       # slab
    b += 2 * sub(L) * lane(cout_p) * out_itm                 # output
    if add_res:
        b += 2 * sub(L) * lane(cout_p) * 4                   # f32 residual
    b += 2 * (3 * sub(c3) * lane(cmid) + sub(cmid) * lane(cout_p)) * in_itm
    b += 2 * (sub(1) * lane(cmid) + sub(1) * lane(cout_p)) * 4
    return b


def _pick_block_rows(n, h, w, c3, cmid, cout_p, in_itm, out_itm, add_res, budget,
                     max_rows=4096):
    """Largest divisor of h whose per-step working set fits the tile budget."""
    best = 1
    for rb in range(1, h + 1):
        if h % rb:
            continue
        if rb * w > max_rows:
            continue
        if _step_bytes(rb, w, c3, cmid, cout_p, in_itm, out_itm, add_res) \
                > budget["tile_budget"]:
            continue
        best = rb
    # v7x: guarantee >= min_grid parallel steps so both TensorCores get work.
    if n * (h // best) < budget["min_grid"]:
        for rb in range(best - 1, 0, -1):
            if h % rb == 0 and n * (h // rb) >= budget["min_grid"]:
                best = rb
                break
    return best


def _pick_row_chunk(L, cmid, cout_p):
    # Keep the f32 accumulator / projection result within ~16 vregs per chunk so
    # accumulation stays register-resident (no spills back to VMEM).
    groups = max(_round_up(max(cmid, cout_p), 128) // 128, 1)
    return min(L, max(8, 128 // groups))


def _vmem_limit(est_bytes, cap):
    # Only raise the scoped limit when the working set needs it; never request
    # the whole physical VMEM (no compiler headroom on v7x's 64 MiB).
    if est_bytes <= 12 * 1024 * 1024:
        return None
    return int(min(max(int(est_bytes * 1.25), 16 << 20), cap))


# ---------------------------------------------------------------------------
# Fused kernel, stride-1 path: kw-folded slab, register accumulation
# ---------------------------------------------------------------------------
def _fused_mbconv_kernel(slab_ref, w1_ref, b1_ref, w2_ref, b2_ref, *rest,
                         width, rows, row_chunk, add_res):
    """One grid step = `rows` output rows of one image (full width).

    slab_ref : (S, 3*Cin)        S = (rows+2)*width; kw-folded, wrap-pre-zeroed
    w1_ref   : (3, 3*Cin, Cmid)  BN-scale-folded 3x3 weights, kh-major
    b1_ref   : (1, Cmid)   f32   BN shift of the expand conv
    w2_ref   : (Cmid, CoutP)     BN-scale-folded 1x1 weights (lane-padded)
    b2_ref   : (1, CoutP)  f32   BN shift of the project conv (lane-padded)
    res_ref  : (L, CoutP)  f32   residual (only when add_res)
    o_ref    : (L, CoutP)        L = rows*width
    """
    if add_res:
        res_ref, o_ref = rest
    else:
        (o_ref,) = rest

    # Hoist the small weight / shift loads out of the row-chunk loop.
    w1_taps = [w1_ref[k] for k in range(3)]
    w2 = w2_ref[...]
    b1 = b1_ref[...]
    b2 = b2_ref[...]

    L = rows * width
    o = 0
    while o < L:                       # static Python loop -> fully unrolled
        sz = min(row_chunk, L - o)
        # 3x3 conv == 3 MXU dots (K = 3*Cin) against row-shifted slab windows,
        # chained in registers (no VMEM scratch round trips).
        acc = jnp.dot(slab_ref[pl.ds(o, sz), :], w1_taps[0],
                      preferred_element_type=jnp.float32)
        acc = acc + jnp.dot(slab_ref[pl.ds(o + width, sz), :], w1_taps[1],
                            preferred_element_type=jnp.float32)
        acc = acc + jnp.dot(slab_ref[pl.ds(o + 2 * width, sz), :], w1_taps[2],
                            preferred_element_type=jnp.float32)
        # f32 epilogue: BN shift + GELU(tanh), then the projecting 1x1 conv.
        y = _gelu_tanh(acc + b1).astype(w2.dtype)
        z = jnp.dot(y, w2, preferred_element_type=jnp.float32) + b2
        if add_res:
            z = z + res_ref[pl.ds(o, sz), :].astype(jnp.float32)
        o_ref[pl.ds(o, sz), :] = z.astype(o_ref.dtype)
        o += row_chunk


# ---------------------------------------------------------------------------
# Fused kernel, general-stride fallback: im2col patches -> two fused matmuls
# ---------------------------------------------------------------------------
def _fused_patches_kernel(p_ref, w1_ref, b1_ref, w2_ref, b2_ref, o_ref):
    acc = jnp.dot(p_ref[...], w1_ref[...], preferred_element_type=jnp.float32)
    y = _gelu_tanh(acc + b1_ref[...]).astype(w2_ref.dtype)
    z = jnp.dot(y, w2_ref[...], preferred_element_type=jnp.float32) + b2_ref[...]
    o_ref[...] = z.astype(o_ref.dtype)


def _im2col_3x3(x_nhwc, stride):
    """JAX-level im2col (only used for the stride>1 fallback path).

    TODO(synk): extend the slab scheme to stride 2 (strided pl.ds) to drop the
    9x input inflation of this fallback.
    """
    n, h, w, c = x_nhwc.shape
    ho = (h + 2 - 3) // stride + 1
    wo = (w + 2 - 3) // stride + 1
    xp = jnp.pad(x_nhwc, ((0, 0), (1, 1), (1, 1), (0, 0)))
    taps = []
    for kh in range(3):
        for kw in range(3):
            taps.append(xp[:, kh:kh + stride * ho:stride, kw:kw + stride * wo:stride, :])
    patches = jnp.stack(taps, axis=3)                  # [N, Ho, Wo, 9, C]
    return patches.reshape(n * ho * wo, 9 * c), ho, wo


# ---------------------------------------------------------------------------
# Wrappers around pallas_call
# ---------------------------------------------------------------------------
def _fused_stride1(x_nhwc_f32, w1f, shift1, w2f, shift2, *, add_res, compute_dtype,
                   out_dtype, cout, cout_p, block_rows=None):
    n, h, w, cin = x_nhwc_f32.shape
    c3 = 3 * cin
    cmid = w1f.shape[-1]
    budget = _tpu_budget()
    in_itm = jnp.dtype(compute_dtype).itemsize
    out_itm = jnp.dtype(out_dtype).itemsize

    rb = block_rows or _pick_block_rows(n, h, w, c3, cmid, cout_p,
                                        in_itm, out_itm, add_res, budget)
    assert h % rb == 0, (h, rb)
    n_blk = h // rb
    L = rb * w
    S = (rb + 2) * w

    x = x_nhwc_f32.astype(compute_dtype)
    # kw-folded "3-slab": channels = [x[.., ow-1], x[.., ow], x[.., ow+1]] with
    # the width wrap pre-zeroed -> no in-kernel masks, K = 3*Cin per dot.
    xp = jnp.pad(x, ((0, 0), (1, 1), (0, 0), (0, 0)))                 # height halo
    left = jnp.pad(xp[:, :, :-1, :], ((0, 0), (0, 0), (1, 0), (0, 0)))
    right = jnp.pad(xp[:, :, 1:, :], ((0, 0), (0, 0), (0, 1), (0, 0)))
    slab3 = jnp.concatenate([left, xp, right], axis=-1)               # (N,H+2,W,3Cin)

    if n_blk == 1:
        slabs = slab3.reshape(n, (h + 2) * w, c3)
    else:
        # TODO(synk): overlapping row blocks still materialize an (rb+2)/rb-
        # inflated copy in HBM; a manual halo DMA (memory_space=pl.ANY +
        # make_async_copy) would avoid it when VMEM forces small rb.
        blocks = jnp.stack([slab3[:, j * rb:j * rb + rb + 2] for j in range(n_blk)],
                           axis=1)
        slabs = blocks.reshape(n * n_blk, S, c3)
    G = slabs.shape[0]

    w1_3d = w1f.reshape(3, c3, cmid)        # kh-major; (kw, cin) folded into K

    operands = [slabs, w1_3d, shift1, w2f, shift2]
    in_specs = [
        pl.BlockSpec((None, S, c3), lambda g: (g, 0, 0)),
        # constant block index => fetched once, not re-DMA'd per step
        pl.BlockSpec((3, c3, cmid), lambda g: (0, 0, 0)),
        pl.BlockSpec((1, cmid), lambda g: (0, 0)),
        pl.BlockSpec((cmid, cout_p), lambda g: (0, 0)),
        pl.BlockSpec((1, cout_p), lambda g: (0, 0)),
    ]
    if add_res:
        # Residual passed separately in f32 (exact skip-add), lane-padded to CoutP.
        res = x_nhwc_f32.reshape(n, n_blk, rb, w, cin).reshape(G, L, cin)
        if cout_p != cin:
            res = jnp.pad(res, ((0, 0), (0, 0), (0, cout_p - cin)))
        operands.append(res.astype(jnp.float32))
        in_specs.append(pl.BlockSpec((None, L, cout_p), lambda g: (g, 0, 0)))

    est = _step_bytes(rb, w, c3, cmid, cout_p, in_itm, out_itm, add_res)
    kern = partial(_fused_mbconv_kernel, width=w, rows=rb,
                   row_chunk=_pick_row_chunk(L, cmid, cout_p), add_res=add_res)

    out = pl.pallas_call(
        kern,
        out_shape=jax.ShapeDtypeStruct((G, L, cout_p), out_dtype),
        grid_spec=pltpu.PrefetchScalarGridSpec(
            num_scalar_prefetch=0,
            grid=(G,),
            in_specs=in_specs,
            out_specs=pl.BlockSpec((None, L, cout_p), lambda g: (g, 0, 0)),
        ),
        compiler_params=pltpu.CompilerParams(
            dimension_semantics=("parallel",),
            vmem_limit_bytes=_vmem_limit(est, budget["vmem_cap"])),
    )(*operands)

    out = out.reshape(n, n_blk, rb, w, cout_p).reshape(n, h, w, cout_p)
    return out[..., :cout]


def _fused_patches(x_nhwc_f32, w1f, shift1, w2f, shift2, *, stride, compute_dtype,
                   out_dtype, cout, cout_p, tm=512):
    n, h, w, cin = x_nhwc_f32.shape
    cmid = w1f.shape[-1]
    patches, ho, wo = _im2col_3x3(x_nhwc_f32.astype(compute_dtype), stride)
    M = patches.shape[0]
    tm = min(tm, max(8, _round_up(M, 8)))
    m_pad = pl.cdiv(M, tm) * tm
    if m_pad != M:
        patches = jnp.pad(patches, ((0, m_pad - M), (0, 0)))

    out = pl.pallas_call(
        _fused_patches_kernel,
        out_shape=jax.ShapeDtypeStruct((m_pad, cout_p), out_dtype),
        grid_spec=pltpu.PrefetchScalarGridSpec(
            num_scalar_prefetch=0,
            grid=(m_pad // tm,),
            in_specs=[
                pl.BlockSpec((tm, 9 * cin), lambda i: (i, 0)),
                pl.BlockSpec((9 * cin, cmid), lambda i: (0, 0)),
                pl.BlockSpec((1, cmid), lambda i: (0, 0)),
                pl.BlockSpec((cmid, cout_p), lambda i: (0, 0)),
                pl.BlockSpec((1, cout_p), lambda i: (0, 0)),
            ],
            out_specs=pl.BlockSpec((tm, cout_p), lambda i: (i, 0)),
        ),
        compiler_params=pltpu.CompilerParams(dimension_semantics=("parallel",)),
    )(patches, w1f.reshape(9 * cin, cmid), shift1, w2f, shift2)
    return out[:M, :cout].reshape(n, ho, wo, cout)


# ---------------------------------------------------------------------------
# MBConv forward (fused=True branch of the PyTorch module)
# ---------------------------------------------------------------------------
def mbconv_forward(x_nchw, params, *, stride, compute_dtype=jnp.bfloat16,
                   block_rows=None):
    n, cin, h, w = x_nchw.shape
    w1 = params["w1"]                 # [3, 3, Cin, Cmid]  (HWIO)
    w2 = params["w2"]                 # [Cmid, Cout]
    cmid, cout = w1.shape[-1], w2.shape[-1]
    add_m = (stride == 1) and (cin == cout)
    out_dtype = x_nchw.dtype

    # Fold BN (eval mode) scales into the weights; keep only the shifts.
    scale1 = params["g1"] / jnp.sqrt(params["v1"] + EPS)
    shift1 = (params["b1"] - params["m1"] * scale1).reshape(1, cmid).astype(jnp.float32)
    scale2 = params["g2"] / jnp.sqrt(params["v2"] + EPS)
    shift2 = (params["b2"] - params["m2"] * scale2).reshape(1, cout).astype(jnp.float32)
    w1f = (w1 * scale1).astype(compute_dtype)            # [3,3,Cin,Cmid]
    w2f = (w2 * scale2).astype(compute_dtype)            # [Cmid,Cout]

    # Lane-dense output: pad small Cout to a full 128-lane store width.
    cout_p = 128 if cout < 128 else cout
    if cout_p != cout:
        w2f = jnp.pad(w2f, ((0, 0), (0, cout_p - cout)))
        shift2 = jnp.pad(shift2, ((0, 0), (0, cout_p - cout)))

    x_nhwc_f32 = jnp.transpose(x_nchw, (0, 2, 3, 1)).astype(jnp.float32)

    if stride == 1:
        z = _fused_stride1(x_nhwc_f32, w1f, shift1, w2f, shift2,
                           add_res=add_m, compute_dtype=compute_dtype,
                           out_dtype=out_dtype, cout=cout, cout_p=cout_p,
                           block_rows=block_rows)
    else:
        # stride>1: JAX-level im2col feeding the same fused matmul kernel.
        z = _fused_patches(x_nhwc_f32, w1f, shift1, w2f, shift2, stride=stride,
                           compute_dtype=compute_dtype, out_dtype=out_dtype,
                           cout=cout, cout_p=cout_p)

    return jnp.transpose(z, (0, 3, 1, 2))                # back to NCHW


# ---------------------------------------------------------------------------
# Deterministic parameter init (shapes from MBConv.__init__, fused=True)
# ---------------------------------------------------------------------------
def init_params(key, in_ch, out_ch, r):
    cmid = r * in_ch
    ks = jax.random.split(key, 12)
    f32 = jnp.float32
    return {
        "w1": 0.1 * jax.random.normal(ks[0], (3, 3, in_ch, cmid), f32),
        "g1": 1.0 + 0.1 * jax.random.normal(ks[1], (cmid,), f32),
        "b1": 0.1 * jax.random.normal(ks[2], (cmid,), f32),
        "m1": 0.1 * jax.random.normal(ks[3], (cmid,), f32),
        "v1": 1.0 + 0.1 * jnp.abs(jax.random.normal(ks[4], (cmid,), f32)),
        "w2": 0.1 * jax.random.normal(ks[5], (cmid, out_ch), f32),
        "g2": 1.0 + 0.1 * jax.random.normal(ks[6], (out_ch,), f32),
        "b2": 0.1 * jax.random.normal(ks[7], (out_ch,), f32),
        "m2": 0.1 * jax.random.normal(ks[8], (out_ch,), f32),
        "v2": 1.0 + 0.1 * jnp.abs(jax.random.normal(ks[9], (out_ch,), f32)),
    }


# ---------------------------------------------------------------------------
# Pure-JAX reference (for in-script correctness check)
# ---------------------------------------------------------------------------
def mbconv_reference(x_nchw, params, *, stride):
    x = jnp.transpose(x_nchw, (0, 2, 3, 1))
    y = jax.lax.conv_general_dilated(
        x, params["w1"], (stride, stride), ((1, 1), (1, 1)),
        dimension_numbers=("NHWC", "HWIO", "NHWC"))
    scale1 = params["g1"] / jnp.sqrt(params["v1"] + EPS)
    shift1 = params["b1"] - params["m1"] * scale1
    y = _gelu_tanh(y * scale1 + shift1)
    z = jnp.einsum("nhwc,co->nhwo", y, params["w2"])
    scale2 = params["g2"] / jnp.sqrt(params["v2"] + EPS)
    shift2 = params["b2"] - params["m2"] * scale2
    z = z * scale2 + shift2
    if stride == 1 and x.shape[-1] == z.shape[-1]:
        z = z + x
    return jnp.transpose(z, (0, 3, 1, 2))


if __name__ == "__main__":
    key = jax.random.PRNGKey(0)
    kx, kp = jax.random.split(key)

    # Small shapes: batch=2, in_ch=4, out_ch=4, H=W=16, stride=1, expansion r=4
    N, Cin, H, W = 2, 4, 16, 16
    Cout, stride, r = 4, 1, 4

    x = jax.random.normal(kx, (N, Cin, H, W), jnp.float32)
    params = init_params(kp, Cin, Cout, r)

    ref = jax.block_until_ready(mbconv_reference(x, params, stride=stride))

    # Default path: bf16 MXU operands, f32 accumulation + f32 epilogue/residual.
    out = jax.block_until_ready(mbconv_forward(x, params, stride=stride))
    assert out.shape == (N, Cout, H, W), out.shape
    np.testing.assert_allclose(np.asarray(out), np.asarray(ref), rtol=3e-2, atol=3e-2)

    # f32 operand path (exact-mode check, tight tolerance).
    out_f32 = jax.block_until_ready(
        mbconv_forward(x, params, stride=stride, compute_dtype=jnp.float32))
    np.testing.assert_allclose(np.asarray(out_f32), np.asarray(ref),
                               rtol=2e-4, atol=2e-4)

    print("KERNEL_OK")
</pallas_src>

<mosaic_0001>
module attributes {stable_mosaic.version = 11 : i64} {
  func.func @_fused_mbconv_kernel(%arg0: i32, %arg1: memref<1x288x12xbf16, #tpu.memory_space<vmem>>, %arg2: memref<3x12x16xbf16, #tpu.memory_space<vmem>>, %arg3: memref<1x16xf32, #tpu.memory_space<vmem>>, %arg4: memref<16x128xbf16, #tpu.memory_space<vmem>>, %arg5: memref<1x128xf32, #tpu.memory_space<vmem>>, %arg6: memref<1x256x128xf32, #tpu.memory_space<vmem>>, %arg7: memref<1x256x128xf32, #tpu.memory_space<vmem>>) attributes {dimension_semantics = [#tpu.dimension_semantics<parallel>], iteration_bounds = array<i64: 2>, scalar_prefetch = 0 : i64, scratch_operands = 0 : i64, tpu.core_type = #tpu.core_type<tc>, window_params = [{transform_indices = @transform_0, window_bounds = array<i64: 1, 288, 12>}, {pipeline_mode = #tpu.pipeline_mode<synchronous>, transform_indices = @transform_1, window_bounds = array<i64: 3, 12, 16>}, {pipeline_mode = #tpu.pipeline_mode<synchronous>, transform_indices = @transform_2, window_bounds = array<i64: 1, 16>}, {pipeline_mode = #tpu.pipeline_mode<synchronous>, transform_indices = @transform_3, window_bounds = array<i64: 16, 128>}, {pipeline_mode = #tpu.pipeline_mode<synchronous>, transform_indices = @transform_4, window_bounds = array<i64: 1, 128>}, {transform_indices = @transform_5, window_bounds = array<i64: 1, 256, 128>}, {transform_indices = @transform_6, window_bounds = array<i64: 1, 256, 128>}]} {
    %c0 = arith.constant 0 : index
    %c0_0 = arith.constant 0 : index
    %c0_1 = arith.constant 0 : index
    %0 = vector.load %arg2[%c0, %c0_0, %c0_1] : memref<3x12x16xbf16, #tpu.memory_space<vmem>>, vector<1x12x16xbf16>
    %1 = vector.shape_cast %0 : vector<1x12x16xbf16> to vector<12x16xbf16>
    %c1 = arith.constant 1 : index
    %c0_2 = arith.constant 0 : index
    %c0_3 = arith.constant 0 : index
    %2 = vector.load %arg2[%c1, %c0_2, %c0_3] : memref<3x12x16xbf16, #tpu.memory_space<vmem>>, vector<1x12x16xbf16>
    %3 = vector.shape_cast %2 : vector<1x12x16xbf16> to vector<12x16xbf16>
    %c2 = arith.constant 2 : index
    %c0_4 = arith.constant 0 : index
    %c0_5 = arith.constant 0 : index
    %4 = vector.load %arg2[%c2, %c0_4, %c0_5] : memref<3x12x16xbf16, #tpu.memory_space<vmem>>, vector<1x12x16xbf16>
    %5 = vector.shape_cast %4 : vector<1x12x16xbf16> to vector<12x16xbf16>
    %c0_6 = arith.constant 0 : index
    %c0_7 = arith.constant 0 : index
    %6 = vector.load %arg4[%c0_6, %c0_7] : memref<16x128xbf16, #tpu.memory_space<vmem>>, vector<16x128xbf16>
    %c0_8 = arith.constant 0 : index
    %c0_9 = arith.constant 0 : index
    %7 = vector.load %arg3[%c0_8, %c0_9] : memref<1x16xf32, #tpu.memory_space<vmem>>, vector<1x16xf32>
    %c0_10 = arith.constant 0 : index
    %c0_11 = arith.constant 0 : index
    %8 = vector.load %arg5[%c0_10, %c0_11] : memref<1x128xf32, #tpu.memory_space<vmem>>, vector<1x128xf32>
    %c0_12 = arith.constant 0 : index
    %c0_13 = arith.constant 0 : index
    %c0_14 = arith.constant 0 : index
    %9 = vector.load %arg1[%c0_12, %c0_13, %c0_14] : memref<1x288x12xbf16, #tpu.memory_space<vmem>>, vector<1x128x12xbf16>
    %10 = vector.shape_cast %9 : vector<1x128x12xbf16> to vector<128x12xbf16>
    %cst = arith.constant dense<0.000000e+00> : vector<128x16xf32>
    %11 = tpu.matmul %10, %1, %cst {dimension_numbers = #tpu.dot_dimension_numbers<[1], [0], [0], [1], [0, 0, 1, 1], [], []>} : vector<128x12xbf16>, vector<12x16xbf16>, vector<128x16xf32> -> vector<128x16xf32>
    %c0_15 = arith.constant 0 : index
    %c16 = arith.constant 16 : index
    %c0_16 = arith.constant 0 : index
    %12 = vector.load %arg1[%c0_15, %c16, %c0_16] : memref<1x288x12xbf16, #tpu.memory_space<vmem>>, vector<1x128x12xbf16>
    %13 = vector.shape_cast %12 : vector<1x128x12xbf16> to vector<128x12xbf16>
    %cst_17 = arith.constant dense<0.000000e+00> : vector<128x16xf32>
    %14 = tpu.matmul %13, %3, %cst_17 {dimension_numbers = #tpu.dot_dimension_numbers<[1], [0], [0], [1], [0, 0, 1, 1], [], []>} : vector<128x12xbf16>, vector<12x16xbf16>, vector<128x16xf32> -> vector<128x16xf32>
    %15 = arith.addf %11, %14 : vector<128x16xf32>
    %c0_18 = arith.constant 0 : index
    %c32 = arith.constant 32 : index
    %c0_19 = arith.constant 0 : index
    %16 = vector.load %arg1[%c0_18, %c32, %c0_19] : memref<1x288x12xbf16, #tpu.memory_space<vmem>>, vector<1x128x12xbf16>
    %17 = vector.shape_cast %16 : vector<1x128x12xbf16> to vector<128x12xbf16>
    %cst_20 = arith.constant dense<0.000000e+00> : vector<128x16xf32>
    %18 = tpu.matmul %17, %5, %cst_20 {dimension_numbers = #tpu.dot_dimension_numbers<[1], [0], [0], [1], [0, 0, 1, 1], [], []>} : vector<128x12xbf16>, vector<12x16xbf16>, vector<128x16xf32> -> vector<128x16xf32>
    %19 = arith.addf %15, %18 : vector<128x16xf32>
    %20 = vector.broadcast %7 : vector<1x16xf32> to vector<128x16xf32>
    %21 = arith.addf %19, %20 : vector<128x16xf32>
    %cst_21 = arith.constant 5.000000e-01 : f32
    %22 = vector.broadcast %cst_21 : f32 to vector<128x16xf32>
    %23 = arith.mulf %22, %21 : vector<128x16xf32>
    %cst_22 = arith.constant 4.471500e-02 : f32
    %24 = vector.broadcast %cst_22 : f32 to vector<128x16xf32>
    %25 = arith.mulf %24, %21 : vector<128x16xf32>
    %26 = arith.mulf %25, %21 : vector<128x16xf32>
    %27 = arith.mulf %26, %21 : vector<128x16xf32>
    %28 = arith.addf %21, %27 : vector<128x16xf32>
    %cst_23 = arith.constant 0.797884583 : f32
    %29 = vector.broadcast %cst_23 : f32 to vector<128x16xf32>
    %30 = arith.mulf %29, %28 : vector<128x16xf32>
    %31 = math.tanh %30 : vector<128x16xf32>
    %cst_24 = arith.constant 1.000000e+00 : f32
    %32 = vector.broadcast %cst_24 : f32 to vector<128x16xf32>
    %33 = arith.addf %32, %31 : vector<128x16xf32>
    %34 = arith.mulf %23, %33 : vector<128x16xf32>
    %35 = arith.truncf %34 : vector<128x16xf32> to vector<128x16xbf16>
    %cst_25 = arith.constant dense<0.000000e+00> : vector<128x128xf32>
    %36 = tpu.matmul %35, %6, %cst_25 {dimension_numbers = #tpu.dot_dimension_numbers<[1], [0], [0], [1], [0, 0, 1, 1], [], []>} : vector<128x16xbf16>, vector<16x128xbf16>, vector<128x128xf32> -> vector<128x128xf32>
    %37 = vector.broadcast %8 : vector<1x128xf32> to vector<128x128xf32>
    %38 = arith.addf %36, %37 : vector<128x128xf32>
    %c0_26 = arith.constant 0 : index
    %c0_27 = arith.constant 0 : index
    %c0_28 = arith.constant 0 : index
    %39 = vector.load %arg6[%c0_26, %c0_27, %c0_28] : memref<1x256x128xf32, #tpu.memory_space<vmem>>, vector<1x128x128xf32>
    %40 = vector.shape_cast %39 : vector<1x128x128xf32> to vector<128x128xf32>
    %41 = arith.addf %38, %40 : vector<128x128xf32>
    %c0_29 = arith.constant 0 : index
    %c0_30 = arith.constant 0 : index
    %c0_31 = arith.constant 0 : index
    %42 = vector.load %arg7[%c0_29, %c0_30, %c0_31] : memref<1x256x128xf32, #tpu.memory_space<vmem>>, vector<1x128x128xf32>
    %43 = vector.shape_cast %42 : vector<1x128x128xf32> to vector<128x128xf32>
    %44 = vector.shape_cast %41 : vector<128x128xf32> to vector<1x128x128xf32>
    tpu.vector_store %arg7[%c0_29, %c0_30, %c0_31], %44 {strides = array<i32>} : memref<1x256x128xf32, #tpu.memory_space<vmem>>, vector<1x128x128xf32>,
    %c0_32 = arith.constant 0 : index
    %c128 = arith.constant 128 : index
    %c0_33 = arith.constant 0 : index
    %45 = vector.load %arg1[%c0_32, %c128, %c0_33] : memref<1x288x12xbf16, #tpu.memory_space<vmem>>, vector<1x128x12xbf16>
    %46 = vector.shape_cast %45 : vector<1x128x12xbf16> to vector<128x12xbf16>
    %cst_34 = arith.constant dense<0.000000e+00> : vector<128x16xf32>
    %47 = tpu.matmul %46, %1, %cst_34 {dimension_numbers = #tpu.dot_dimension_numbers<[1], [0], [0], [1], [0, 0, 1, 1], [], []>} : vector<128x12xbf16>, vector<12x16xbf16>, vector<128x16xf32> -> vector<128x16xf32>
    %c0_35 = arith.constant 0 : index
    %c144 = arith.constant 144 : index
    %c0_36 = arith.constant 0 : index
    %48 = vector.load %arg1[%c0_35, %c144, %c0_36] : memref<1x288x12xbf16, #tpu.memory_space<vmem>>, vector<1x128x12xbf16>
    %49 = vector.shape_cast %48 : vector<1x128x12xbf16> to vector<128x12xbf16>
    %cst_37 = arith.constant dense<0.000000e+00> : vector<128x16xf32>
    %50 = tpu.matmul %49, %3, %cst_37 {dimension_numbers = #tpu.dot_dimension_numbers<[1], [0], [0], [1], [0, 0, 1, 1], [], []>} : vector<128x12xbf16>, vector<12x16xbf16>, vector<128x16xf32> -> vector<128x16xf32>
    %51 = arith.addf %47, %50 : vector<128x16xf32>
    %c0_38 = arith.constant 0 : index
    %c160 = arith.constant 160 : index
    %c0_39 = arith.constant 0 : index
    %52 = vector.load %arg1[%c0_38, %c160, %c0_39] : memref<1x288x12xbf16, #tpu.memory_space<vmem>>, vector<1x128x12xbf16>
    %53 = vector.shape_cast %52 : vector<1x128x12xbf16> to vector<128x12xbf16>
    %cst_40 = arith.constant dense<0.000000e+00> : vector<128x16xf32>
    %54 = tpu.matmul %53, %5, %cst_40 {dimension_numbers = #tpu.dot_dimension_numbers<[1], [0], [0], [1], [0, 0, 1, 1], [], []>} : vector<128x12xbf16>, vector<12x16xbf16>, vector<128x16xf32> -> vector<128x16xf32>
    %55 = arith.addf %51, %54 : vector<128x16xf32>
    %56 = vector.broadcast %7 : vector<1x16xf32> to vector<128x16xf32>
    %57 = arith.addf %55, %56 : vector<128x16xf32>
    %cst_41 = arith.constant 5.000000e-01 : f32
    %58 = vector.broadcast %cst_41 : f32 to vector<128x16xf32>
    %59 = arith.mulf %58, %57 : vector<128x16xf32>
    %cst_42 = arith.constant 4.471500e-02 : f32
    %60 = vector.broadcast %cst_42 : f32 to vector<128x16xf32>
    %61 = arith.mulf %60, %57 : vector<128x16xf32>
    %62 = arith.mulf %61, %57 : vector<128x16xf32>
    %63 = arith.mulf %62, %57 : vector<128x16xf32>
    %64 = arith.addf %57, %63 : vector<128x16xf32>
    %cst_43 = arith.constant 0.797884583 : f32
    %65 = vector.broadcast %cst_43 : f32 to vector<128x16xf32>
    %66 = arith.mulf %65, %64 : vector<128x16xf32>
    %67 = math.tanh %66 : vector<128x16xf32>
    %cst_44 = arith.constant 1.000000e+00 : f32
    %68 = vector.broadcast %cst_44 : f32 to vector<128x16xf32>
    %69 = arith.addf %68, %67 : vector<128x16xf32>
    %70 = arith.mulf %59, %69 : vector<128x16xf32>
    %71 = arith.truncf %70 : vector<128x16xf32> to vector<128x16xbf16>
    %cst_45 = arith.constant dense<0.000000e+00> : vector<128x128xf32>
    %72 = tpu.matmul %71, %6, %cst_45 {dimension_numbers = #tpu.dot_dimension_numbers<[1], [0], [0], [1], [0, 0, 1, 1], [], []>} : vector<128x16xbf16>, vector<16x128xbf16>, vector<128x128xf32> -> vector<128x128xf32>
    %73 = vector.broadcast %8 : vector<1x128xf32> to vector<128x128xf32>
    %74 = arith.addf %72, %73 : vector<128x128xf32>
    %c0_46 = arith.constant 0 : index
    %c128_47 = arith.constant 128 : index
    %c0_48 = arith.constant 0 : index
    %75 = vector.load %arg6[%c0_46, %c128_47, %c0_48] : memref<1x256x128xf32, #tpu.memory_space<vmem>>, vector<1x128x128xf32>
    %76 = vector.shape_cast %75 : vector<1x128x128xf32> to vector<128x128xf32>
    %77 = arith.addf %74, %76 : vector<128x128xf32>
    %c0_49 = arith.constant 0 : index
    %c128_50 = arith.constant 128 : index
    %c0_51 = arith.constant 0 : index
    %78 = vector.load %arg7[%c0_49, %c128_50, %c0_51] : memref<1x256x128xf32, #tpu.memory_space<vmem>>, vector<1x128x128xf32>
    %79 = vector.shape_cast %78 : vector<1x128x128xf32> to vector<128x128xf32>
    %80 = vector.shape_cast %77 : vector<128x128xf32> to vector<1x128x128xf32>
    tpu.vector_store %arg7[%c0_49, %c128_50, %c0_51], %80 {strides = array<i32>} : memref<1x256x128xf32, #tpu.memory_space<vmem>>, vector<1x128x128xf32>,
    return
  }
  func.func @transform_0(%arg0: i32) -> (i32, i32, i32) {
    %c0_i32 = arith.constant 0 : i32
    %c0_i32_0 = arith.constant 0 : i32
    %c0_i32_1 = arith.constant 0 : i32
    return %arg0, %c0_i32, %c0_i32_0 : i32, i32, i32
  }
  func.func @transform_1(%arg0: i32) -> (i32, i32, i32) {
    %c0_i32 = arith.constant 0 : i32
    %c0_i32_0 = arith.constant 0 : i32
    %c0_i32_1 = arith.constant 0 : i32
    %c0_i32_2 = arith.constant 0 : i32
    return %c0_i32, %c0_i32_0, %c0_i32_1 : i32, i32, i32
  }
  func.func @transform_2(%arg0: i32) -> (i32, i32) {
    %c0_i32 = arith.constant 0 : i32
    %c0_i32_0 = arith.constant 0 : i32
    %c0_i32_1 = arith.constant 0 : i32
    return %c0_i32, %c0_i32_0 : i32, i32
  }
  func.func @transform_3(%arg0: i32) -> (i32, i32) {
    %c0_i32 = arith.constant 0 : i32
    %c0_i32_0 = arith.constant 0 : i32
    %c0_i32_1 = arith.constant 0 : i32
    return %c0_i32, %c0_i32_0 : i32, i32
  }
  func.func @transform_4(%arg0: i32) -> (i32, i32) {
    %c0_i32 = arith.constant 0 : i32
    %c0_i32_0 = arith.constant 0 : i32
    %c0_i32_1 = arith.constant 0 : i32
    return %c0_i32, %c0_i32_0 : i32, i32
  }
  func.func @transform_5(%arg0: i32) -> (i32, i32, i32) {
    %c0_i32 = arith.constant 0 : i32
    %c0_i32_0 = arith.constant 0 : i32
    %c0_i32_1 = arith.constant 0 : i32
    return %arg0, %c0_i32, %c0_i32_0 : i32, i32, i32
  }
  func.func @transform_6(%arg0: i32) -> (i32, i32, i32) {
    %c0_i32 = arith.constant 0 : i32
    %c0_i32_0 = arith.constant 0 : i32
    %c0_i32_1 = arith.constant 0 : i32
    return %arg0, %c0_i32, %c0_i32_0 : i32, i32, i32
  }
}

</mosaic_0001>

<bundles_post_ra>
// kernel: tpu_custom_call.1
= control target key start
LH: loop header
LB: loop body
LE: loop exit
PB: predicated region body
PF: predicated region fallthrough
CT: control target
= control target key end

     0   :  { %11 = vsyncpa [#allocation3], 0  ;;  %s3420_s0 = inlined_call_operand.vmem [shape: bf16[2,288,12], index: 0, kind: input, shape index: {}]   ;;  %s3421_s1 = inlined_call_operand.vmem [shape: bf16[3,12,16], index: 1, kind: input, shape index: {}]   ;;  %s3422_s2 = inlined_call_operand.vmem [shape: f32[1,16], index: 2, kind: input, shape index: {}]   ;;  %s3423_s3 = inlined_call_operand.vmem [shape: bf16[16,128], index: 3, kind: input, shape index: {}]   ;;  %s3424_s4 = inlined_call_operand.vmem [shape: f32[1,128], index: 4, kind: input, shape index: {}]   ;;  %s3425_s5 = inlined_call_operand.hbm [shape: f32[2,256,128], index: 5, kind: input, shape index: {}]   ;;  %s3426_s6 = inlined_call_operand.hbm [shape: f32[2,256,128], index: 6, kind: output, shape index: {}]  }
   0x1   :  { %13 = vsyncpa [#allocation3 + $0x1], 0 }
   0x2   :  { %14 = vsyncpa [#allocation4], 0 }
   0x3   :  { %16 = vsyncpa [#allocation4 + $0x1], 0  ;;  %s2778_s21 = smov 0   ;;  %s2780_s22 = smov 0  }
   0x4   :  { %s2782_s23 = smov 0   ;;  %s2784_s24 = smov 0  }
   0x5 LB: > { %s2799_s25 = sadd.s32 4294967295, %s2735_s24   ;;  %s2075_s26 = sadd.s32 4294967294, %s2735_s24   ;;  %s2735_s24 = sphi %s2784_s24, %s3439_s24   ;;  %s2731_s23 = sphi %s2782_s23, %s3438_s23   ;;  %s2727_s22 = sphi %s2780_s22, %s3437_s22   ;;  %s2723_s21 = sphi %s2778_s21, %s3436_s21  }
   0x6   : > { %s2803_s27 = sadd.s32 1, %s2735_s24   ;;  %s139_s28 = sadd.s32 1, %s2731_s23 }
   0x7   : > { %s136_s29 = ssub.s32 %s2735_s24, %s2803_s27  ;;  %p146_p0 = scmp.ne.s32.totalorder %s2731_s23, %s2727_s22 }
   0x8   : > { %p137_p1 = scmp.eq.s32.totalorder %s136_s29, 0  ;;  %p147_p2 = scmp.eq.s32.totalorder %s2735_s24, 0 }
   0x9   : > { %p152_p3 = scmp.ne.s32.totalorder %s2727_s22, %s2723_s21  ;;  %p153_p4 = scmp.eq.s32.totalorder %s2799_s25, 0 }
   0xa   : > { %s2815_s30 = scalar_select %p137_p1, %s2731_s23, %s139_s28  }
   0xb   : > { %p2817_p5 = por %p147_p2, %p146_p0  ;;  %p2821_p6 = por %p153_p4, %p152_p3 }
   0xc   : > { %p176_p7 = scmp.eq.s32.totalorder %s2799_s25, 1  ;;  %p182_p8 = scmp.eq.s32.totalorder %s2075_s26, 1 }
   0xd   : > { %p2499_p10 = scmp.lt.s32.totalorder %s2735_s24, 2  ;;  %s222_s11 = sand.u32 1, %s2731_s23  }
   0xe   : > { %p2828_p11 = por %p176_p7, %p146_p0  ;;  %p2832_p12 = por %p182_p8, %p152_p3 }
   0xf   : > { %s2198_s12 = sshll.u32 %s2735_s24, 12  ;;  %s2078_s13 = sshll.u32 %s222_s11, 8 }
  0x10   : > { %s3430_s9 = scalar_select %p2828_p11, 1, 0 }
  0x11   : > { %s3431_s10 = scalar_select %p2832_p12, 1, 0 }
  0x12   : > { %s2841_s16 = scalar_lea.hbm %s3425_s5, %s2198_s12  ;;  %s226_s17 = scalar_lea.vmem [#allocation2], %s2078_s13 }
  0x13   : > { %s233_s18 = sshll.u32 %s226_s17, 4  ;;  %p2845_p13 = pnand %p2499_p10, %p2817_p5  ;;  %s2849_s18 = int_to_ptr.vmem [resolvable:$true] %s233_s18 }
  0x14   : > { %s2851_s20 = scalar_lea.sflag [#allocation3], %s222_s11  ;;  %s2639_s26 = scalar_lea.hbm %s2841_s16, 4096 }
  0x15   : > { %p2640_p0 = scmp.ne.s32.totalorder %s2841_s16, %s2639_s26  ;;  %p2641_p1 = pneg %p2845_p13 }
  0x16   : > { %s2644_s7 = scalar_lea.hbm %s3425_s5, 8192  ;;  %p2645_p4 = scmp.lt.u32.totalorder %s2841_s16, %s3425_s5 }
  0x17   : > { %p2642_p2 = pnand %p2641_p1, %p2640_p0  ;;  %p2646_p5 = scmp.lt.u32.totalorder %s2644_s7, %s2639_s26 }
  0x18   : > { %p2648_p8 = scmp.lt.u32.totalorder %s2639_s26, %s2841_s16 }
  0x19   : > { %p2643_p3 = pneg %p2642_p2  ;;  %p2647_p7 = por %p2646_p5, %p2645_p4 }
  0x1b   : > { %p2649_p10 = por %p2648_p8, %p2647_p7 }
  0x1d   : > { %p2650_p9 = pnand %p2649_p10, %p2643_p3 }
  0x1f   : > { %2653 = shalt.err (!%p2650_p9)
}
  0x20   : > { %s2654_s11 = scalar_lea.vmem %s2849_s18, 4096  ;;  %s2737_s14 = smov [#allocation2]  }
  0x21   : > { %p2655_p0 = scmp.ne.s32.totalorder %s2849_s18, %s2654_s11  ;;  %s2659_s15 = sshll.u32 %s2737_s14, 4  ;;  %s2660_s15 = int_to_ptr.vmem [resolvable:$false] %s2659_s15 }
  0x22   : > { %s2661_s17 = scalar_lea.vmem %s2660_s15, 8192  ;;  %p2662_p11 = scmp.lt.s32.totalorder %s2849_s18, %s2660_s15 }
  0x23   : > { %p2657_p2 = pnand %p2655_p0, %p2641_p1  ;;  %p2663_p4 = scmp.lt.s32.totalorder %s2661_s17, %s2654_s11 }
  0x25   : > { %p2658_p12 = pneg %p2657_p2  ;;  %p2664_p5 = por %p2663_p4, %p2662_p11 }
  0x27   : > { %p2665_p7 = pnand %p2664_p5, %p2658_p12 }
  0x29   : > { %2668 = shalt.err (!%p2665_p7)
}
  0x2a   : > { %s2738_s26 = smov 128   ;;  %s2739_s28 = smov 8  }
  0x2b   : > { %2494 = dma.hbm_to_vmem [thread:$0]  (!%p2845_p13), %s2841_s16, 4096, %s2849_s18, %s2851_s20, %s2738_s26, %s2738_s26, %s2739_s28  }
  0x2c   : > { %p2081_p9 = scmp.ge.s32.totalorder %s2735_s24, 1  ;;  %p241_p1 = scmp.lt.s32.totalorder %s2735_s24, 3 }
  0x2e   : > { %p242_p3 = pnand %p2081_p9, %p241_p1 }
  0x2f   : > { %s2882_s29 = sand.u32 (!%p242_p3), 1, %s2727_s22  }
  0x30   : > { %245 = sbr.rel (%p242_p3) target bundleno = 982 (0x3d6), region = 44  ;;  %s2082_s7 = sshll.u32 (!%p242_p3), %s2882_s29, 8 }
  0x31   : > { %s248_s12 = scalar_lea.sflag (!%p242_p3), [#allocation3], %s2882_s29  ;;  %s2888_s13 = scalar_lea.vmem (!%p242_p3), [#allocation2], %s2082_s7 }
  0x37   : > { %2714 = dma.done.wait (%p2821_p6), %s248_s12, 4096  }
  0x38   : > { %2716 = vsyncadd (%p2821_p6), %s248_s12, 4294963200  ;;  %p285_p11 = scmp.lt.s32.totalorder %s2799_s25, 1  ;;  %vm391_vm0 = vcmask 1045504   ;;  %vm366_vm1 = vcmask 97280   ;;  %v2537_v0 = vld [vmem:[%s3421_s1 + $0x8] sm:$0x3f]  }
  0x39   : > { %2480 = vmatprep.subr.msk.bf16.mxu0 %vm391_vm0, %v2537_v0  ;;  %v2907_v2 = vsel %vm391_vm0, %v2537_v0, 0  ;;  %v2915_v4 = vld [vmem:[%s3421_s1] sm:$0x3f]   ;;  %v2932_v9 = vld [vmem:[%s3421_s1 + $0x10] sm:$0x3f]   ;;  %vm992_vm2 = vcmask 130048  }
  0x3a   : > { %s286_s16 = scalar_select %p285_p11, %s2799_s25, 1  ;;  %2273 = vmatpush3.bf16.msra.mxu0 %v2907_v2  ;;  %v2922_v6 = vsel %vm391_vm0, %v2915_v4, 0  ;;  %v2948_v14 = vsel %vm391_vm0, %v2932_v9, 0  ;;  %v2557_v23 = vld [vmem:[%s3423_s3] sm:$0xff]  }
  0x3b   : > { %2481 = vmatprep.subr.msk.bf16.mxu0 %vm391_vm0, %v2915_v4  ;;  %2326 = vmatprep.subr.bf16.mxu1 %v2557_v23  ;;  %v2981_v24 = vld [vmem:[%s3422_s2] ss:$0 sm:$0xff]  ;;  %p3433_p12 = scmp.ne.s32.totalorder %s3430_s9, 0  ;;  %s2740_s28 = smov [#allocation5]  }
  0x3c   : > { %s2486_s18 = smul.u32 144, %s286_s16  ;;  %2327 = vmatpush3.bf16.msra.mxu1 %v2557_v23  ;;  %s2673_s12 = sshll.u32 %s2740_s28, 4  ;;  %s2674_s12 = int_to_ptr.vmem [resolvable:$false] %s2673_s12 }
  0x3d   : > { %2483 = vmatprep.subr.msk.bf16.mxu1 %vm391_vm0, %v2537_v0  ;;  %s2675_s16 = scalar_lea.vmem %s2674_s12, 8192 }
  0x3e   : > { %s2899_s11 = scalar_lea.vmem %s3420_s0, %s2486_s18 }
  0x3f   : > { %v2538_v1 = vld [vmem:[%s2899_s11 + $0x8] sm:$0xff]   ;;  %v2539_v3 = vld [vmem:[%s2899_s11 + $0x10] sm:$0xff]   ;;  %v2541_v5 = vld [vmem:[%s2899_s11 + $0x18] sm:$0xff]  }
  0x40   : > { %2274 = vmatprep.mubr.msk.bf16.mxu0 %vm366_vm1, %v2538_v1  ;;  %v2542_v7 = vld [vmem:[%s2899_s11 + $0x20] sm:$0xff]   ;;  %v2543_v8 = vld [vmem:[%s2899_s11 + $0x28] sm:$0xff]   ;;  %v2544_v10 = vld [vmem:[%s2899_s11 + $0x30] sm:$0xff]  }
  0x41   : > { %2275 = vmatmul.mubr.msk.bf16.vlgmr.msra.gmra.mrb[0].mxu0 %vm366_vm1, %v2539_v3  ;;  %v2545_v11 = vld [vmem:[%s2899_s11 + $0x38] sm:$0xff]   ;;  %v2546_v12 = vld [vmem:[%s2899_s11 + $0x40] sm:$0xff]   ;;  %v2549_v15 = vld [vmem:[%s2899_s11 + $0x10] sm:$0xff]  }
  0x42   : > { %2291 = vmatpush3.bf16.msra.mxu0 %v2922_v6  ;;  %2278 = vmatprep.mubr.msk.bf16.mxu0 %vm366_vm1, %v2541_v5  ;;  %v2547_v13 = vld [vmem:[%s2899_s11] sm:$0xff]   ;;  %v2550_v16 = vld [vmem:[%s2899_s11 + $0x18] sm:$0xff]   ;;  %v2552_v18 = vld [vmem:[%s2899_s11 + $0x28] sm:$0xff]  }
  0x43   : > { %2482 = vmatprep.subr.msk.bf16.mxu0 %vm391_vm0, %v2932_v9  ;;  %v2551_v17 = vld [vmem:[%s2899_s11 + $0x20] sm:$0xff]   ;;  %v2553_v19 = vld [vmem:[%s2899_s11 + $0x30] sm:$0xff]   ;;  %v2554_v20 = vld [vmem:[%s2899_s11 + $0x38] sm:$0xff]  }
  0x44   : > { %v2555_v21 = vld [vmem:[%s2899_s11 + $0x40] sm:$0xff]   ;;  %v2556_v22 = vld [vmem:[%s2899_s11 + $0x48] sm:$0xff]  }
  0x49   : > { %2279 = vmatmul.mubr.msk.bf16.gmra.mrb[4].mxu0 %vm366_vm1, %v2542_v7 }
  0x4a   : > { %2282 = vmatprep.mubr.msk.bf16.mxu0 %vm366_vm1, %v2543_v8 }
  0x51   : > { %2283 = vmatmul.mubr.msk.bf16.gmra.mrb[8].mxu0 %vm366_vm1, %v2544_v10 }
  0x52   : > { %2286 = vmatprep.mubr.msk.bf16.mxu0 %vm366_vm1, %v2545_v11 }
  0x59   : > { %2287 = vmatmul.mubr.msk.bf16.gmra.mrb[12].mxu0 %vm366_vm1, %v2546_v12 }
  0x5a   : > { %2292 = vmatprep.mubr.msk.bf16.mxu0 %vm366_vm1, %v2547_v13 }
  0x61   : > { %2293 = vmatmul.mubr.msk.bf16.vlgmr.msra.gmra.mrb[0].mxu0 %vm366_vm1, %v2538_v1 }
  0x62   : > { %2309 = vmatpush3.bf16.msra.mxu0 %v2948_v14  ;;  %2296 = vmatprep.mubr.msk.bf16.mxu0 %vm366_vm1, %v2539_v3 }
  0x63   : > { %2398 = vmatprep.subr.bf16.mxu0 %v2557_v23 }
  0x69   : > { %2297 = vmatmul.mubr.msk.bf16.gmra.mrb[4].mxu0 %vm366_vm1, %v2541_v5 }
  0x6a   : > { %2300 = vmatprep.mubr.msk.bf16.mxu0 %vm366_vm1, %v2542_v7 }
  0x71   : > { %2301 = vmatmul.mubr.msk.bf16.gmra.mrb[8].mxu0 %vm366_vm1, %v2543_v8 }
  0x72   : > { %2304 = vmatprep.mubr.msk.bf16.mxu0 %vm366_vm1, %v2544_v10 }
  0x79   : > { %2305 = vmatmul.mubr.msk.bf16.gmra.mrb[12].mxu0 %vm366_vm1, %v2545_v11 }
  0x7a   : > { %2310 = vmatprep.mubr.msk.bf16.mxu0 %vm366_vm1, %v2549_v15 }
  0x81   : > { %2311 = vmatmul.mubr.msk.bf16.vlgmr.msra.gmra.mrb[0].mxu0 %vm366_vm1, %v2550_v16 }
  0x82   : > { %2314 = vmatprep.mubr.msk.bf16.mxu0 %vm366_vm1, %v2551_v17  ;;  %2399 = vmatpush3.bf16.msra.mxu0 %v2557_v23 }
  0x89   : > { %2315 = vmatmul.mubr.msk.bf16.gmra.mrb[4].mxu0 %vm366_vm1, %v2552_v18 }
  0x8a   : > { %2318 = vmatprep.mubr.msk.bf16.mxu0 %vm366_vm1, %v2553_v19 }
  0x91   : > { %2319 = vmatmul.mubr.msk.bf16.gmra.mrb[8].mxu0 %vm366_vm1, %v2554_v20 }
  0x92   : > { %2322 = vmatprep.mubr.msk.bf16.mxu0 %vm366_vm1, %v2555_v21 }
  0x99   : > { %2323 = vmatmul.mubr.msk.bf16.gmra.mrb[12].mxu0 %vm366_vm1, %v2556_v22 }
 0x154   : > { %v2312_v25 = vpop.f32.mrb[0].mxu0 }
 0x155   : > { %v814_v26 = vadd.f32 %v2312_v25, %v2981_v24  ;;  %v727_v27 = vpop.f32.mrb[1].mxu0 }
 0x156   : > { %v812_v28 = vadd.f32 %v2981_v24, %v727_v27  ;;  %v2313_v29 = vpop.f32.mrb[2].mxu0 }
 0x157   : > { %v846_v30 = vmul.f32 0.044715, %v814_v26  ;;  %v815_v31 = vadd.f32 %v2313_v29, %v2981_v24  ;;  %v730_v32 = vpop.f32.mrb[3].mxu0  ;;  %v2990_v48 = vmul.f32 0.5, %v814_v26 }
 0x158   : > { %v844_v33 = vmul.f32 0.044715, %v812_v28  ;;  %v813_v34 = vadd.f32 %v2981_v24, %v730_v32  ;;  %v2993_v51 = vmul.f32 0.5, %v812_v28 }
 0x159   : > { %v862_v35 = vmul.f32 %v846_v30, %v814_v26  ;;  %v847_v36 = vmul.f32 0.044715, %v815_v31  ;;  %v3004_v11 = vmul.f32 0.5, %v815_v31 }
 0x15a   : > { %v860_v37 = vmul.f32 %v844_v33, %v812_v28  ;;  %v845_v38 = vmul.f32 0.044715, %v813_v34  ;;  %v3006_v16 = vmul.f32 0.5, %v813_v34 }
 0x15b   : > { %v878_v39 = vmul.f32 %v862_v35, %v814_v26  ;;  %v863_v40 = vmul.f32 %v847_v36, %v815_v31 }
 0x15c   : > { %v861_v41 = vmul.f32 %v845_v38, %v813_v34  ;;  %v2316_v42 = vpop.f32.mrb[4].mxu0  ;;  %v876_v43 = vmul.f32 %v860_v37, %v812_v28 }
 0x15d   : > { %v894_v44 = vadd.f32 %v878_v39, %v814_v26  ;;  %v879_v45 = vmul.f32 %v863_v40, %v815_v31  ;;  %v2988_v46 = vadd.f32 %v2316_v42, %v2981_v24  ;;  %v743_v47 = vpop.f32.mrb[5].mxu0 }
 0x15e   : > { %v816_v49 = vadd.f32 %v2981_v24, %v743_v47  ;;  %v2317_v50 = vpop.f32.mrb[6].mxu0  ;;  %v877_v52 = vmul.f32 %v861_v41, %v813_v34  ;;  %v892_v53 = vadd.f32 %v876_v43, %v812_v28 }
 0x15f   : > { %v910_v54 = vmul.f32 0.7978846, %v894_v44  ;;  %v895_v55 = vadd.f32 %v879_v45, %v815_v31  ;;  %v850_v56 = vmul.f32 0.044715, %v2988_v46  ;;  %v2997_v57 = vadd.f32 %v2317_v50, %v2981_v24  ;;  %v746_v58 = vpop.f32.mrb[7].mxu0 }
 0x160   : > { %v848_v59 = vmul.f32 0.044715, %v816_v49  ;;  %v817_v60 = vadd.f32 %v2981_v24, %v746_v58  ;;  %v893_v61 = vadd.f32 %v877_v52, %v813_v34  ;;  %v908_v62 = vmul.f32 0.7978846, %v892_v53 }
 0x161   : > { %2575 = vtanh.f32 %v910_v54  ;;  %v911_v63 = vmul.f32 0.7978846, %v895_v55  ;;  %v866_v0 = vmul.f32 %v850_v56, %v2988_v46  ;;  %v851_v1 = vmul.f32 0.044715, %v2997_v57 }
 0x162   : > { %v864_v3 = vmul.f32 %v848_v59, %v816_v49  ;;  %v849_v5 = vmul.f32 0.044715, %v817_v60  ;;  %v909_v7 = vmul.f32 0.7978846, %v893_v61  ;;  %2577 = vtanh.f32 %v908_v62 }
 0x163   : > { %2579 = vtanh.f32 %v911_v63  ;;  %v882_v8 = vmul.f32 %v866_v0, %v2988_v46  ;;  %v867_v10 = vmul.f32 %v851_v1, %v2997_v57  ;;  %v3008_v17 = vmul.f32 0.5, %v816_v49 }
 0x164   : > { %v880_v12 = vmul.f32 %v864_v3, %v816_v49  ;;  %v865_v13 = vmul.f32 %v849_v5, %v817_v60  ;;  %v2320_v15 = vpop.f32.mrb[8].mxu0  ;;  %2581 = vtanh.f32 %v909_v7  ;;  %v3018_v27 = vmul.f32 0.5, %v817_v60 }
 0x165   : > { %v898_v18 = vadd.f32 %v882_v8, %v2988_v46  ;;  %v883_v19 = vmul.f32 %v867_v10, %v2997_v57  ;;  %v3013_v20 = vadd.f32 %v2320_v15, %v2981_v24  ;;  %v759_v21 = vpop.f32.mrb[9].mxu0  ;;  %v3036_v47 = vmul.f32 0.5, %v2988_v46 }
 0x166   : > { %v896_v22 = vadd.f32 %v880_v12, %v816_v49  ;;  %v881_v23 = vmul.f32 %v865_v13, %v817_v60  ;;  %v3016_v25 = vadd.f32 %v2981_v24, %v759_v21  ;;  %v2321_v26 = vpop.f32.mrb[10].mxu0 }
 0x167   : > { %v914_v28 = vmul.f32 0.7978846, %v898_v18  ;;  %v899_v29 = vadd.f32 %v883_v19, %v2997_v57  ;;  %v854_v30 = vmul.f32 0.044715, %v3013_v20  ;;  %v3023_v31 = vadd.f32 %v2321_v26, %v2981_v24  ;;  %v762_v32 = vpop.f32.mrb[11].mxu0 }
 0x168   : > { %v912_v33 = vmul.f32 0.7978846, %v896_v22  ;;  %v897_v34 = vadd.f32 %v881_v23, %v817_v60  ;;  %v852_v35 = vmul.f32 0.044715, %v3016_v25  ;;  %v3027_v36 = vadd.f32 %v2981_v24, %v762_v32 }
 0x169   : > { %2583 = vtanh.f32 %v914_v28  ;;  %v915_v37 = vmul.f32 0.7978846, %v899_v29  ;;  %v870_v38 = vmul.f32 %v854_v30, %v3013_v20  ;;  %v855_v39 = vmul.f32 0.044715, %v3023_v31 }
 0x16a   : > { %2585 = vtanh.f32 %v912_v33  ;;  %v913_v40 = vmul.f32 0.7978846, %v897_v34  ;;  %v868_v41 = vmul.f32 %v852_v35, %v3016_v25  ;;  %v853_v42 = vmul.f32 0.044715, %v3027_v36 }
 0x16b   : > { %v2576_v43 = vpop.eup %2575  ;;  %2587 = vtanh.f32 %v915_v37  ;;  %v886_v44 = vmul.f32 %v870_v38, %v3013_v20  ;;  %v871_v45 = vmul.f32 %v855_v39, %v3023_v31 }
 0x16c   : > { %v2578_v49 = vpop.eup %2577  ;;  %2589 = vtanh.f32 %v913_v40  ;;  %v884_v50 = vmul.f32 %v868_v41, %v3016_v25  ;;  %v869_v52 = vmul.f32 %v853_v42, %v3027_v36  ;;  %v2324_v53 = vpop.f32.mrb[12].mxu0  ;;  %v942_v54 = vadd.f32 1.0, %v2576_v43 }
 0x16d   : > { %v2580_v55 = vpop.eup %2579  ;;  %v902_v56 = vadd.f32 %v886_v44, %v3013_v20  ;;  %v887_v58 = vmul.f32 %v871_v45, %v3023_v31  ;;  %v3043_v59 = vadd.f32 %v2324_v53, %v2981_v24  ;;  %v775_v60 = vpop.f32.mrb[13].mxu0  ;;  %v940_v61 = vadd.f32 1.0, %v2578_v49 }
 0x16e   : > { %v900_v46 = vadd.f32 %v884_v50, %v3016_v25  ;;  %v885_v62 = vmul.f32 %v869_v52, %v3027_v36  ;;  %v3048_v63 = vadd.f32 %v2981_v24, %v775_v60  ;;  %v2325_v0 = vpop.f32.mrb[14].mxu0  ;;  %v943_v1 = vadd.f32 1.0, %v2580_v55  ;;  %v2582_v3 = vpop.eup %2581 }
 0x16f   : > { %v918_v5 = vmul.f32 0.7978846, %v902_v56  ;;  %v903_v7 = vadd.f32 %v887_v58, %v3023_v31  ;;  %v858_v8 = vmul.f32 0.044715, %v3043_v59  ;;  %v3053_v10 = vadd.f32 %v2325_v0, %v2981_v24  ;;  %v778_v12 = vpop.f32.mrb[15].mxu0 }
 0x170   : > { %v916_v13 = vmul.f32 0.7978846, %v900_v46  ;;  %v901_v15 = vadd.f32 %v885_v62, %v3027_v36  ;;  %v856_v18 = vmul.f32 0.044715, %v3048_v63  ;;  %v3058_v19 = vadd.f32 %v2981_v24, %v778_v12 }
 0x171   : > { %2591 = vtanh.f32 %v918_v5  ;;  %v919_v21 = vmul.f32 0.7978846, %v903_v7  ;;  %v874_v22 = vmul.f32 %v858_v8, %v3043_v59  ;;  %v859_v23 = vmul.f32 0.044715, %v3053_v10 }
 0x172   : > { %2593 = vtanh.f32 %v916_v13  ;;  %v917_v26 = vmul.f32 0.7978846, %v901_v15  ;;  %v872_v28 = vmul.f32 %v856_v18, %v3048_v63  ;;  %v857_v29 = vmul.f32 0.044715, %v3058_v19 }
 0x173   : > { %v2584_v30 = vpop.eup %2583  ;;  %2595 = vtanh.f32 %v919_v21  ;;  %v890_v32 = vmul.f32 %v874_v22, %v3043_v59  ;;  %v875_v33 = vmul.f32 %v859_v23, %v3053_v10  ;;  %v941_v34 = vadd.f32 1.0, %v2582_v3 }
 0x174   : > { %v2586_v35 = vpop.eup %2585  ;;  %2597 = vtanh.f32 %v917_v26  ;;  %v888_v37 = vmul.f32 %v872_v28, %v3048_v63  ;;  %v873_v38 = vmul.f32 %v857_v29, %v3058_v19  ;;  %v956_v39 = vmul.f32 %v940_v61, %v2993_v51 }
 0x175   : > { %v2588_v40 = vpop.eup %2587  ;;  %v906_v41 = vadd.f32 %v890_v32, %v3043_v59  ;;  %v891_v42 = vmul.f32 %v875_v33, %v3053_v10  ;;  %v957_v43 = vmul.f32 %v941_v34, %v3006_v16  ;;  %v958_v44 = vmul.f32 %v942_v54, %v2990_v48 }
 0x176   : > { %v2590_v45 = vpop.eup %2589  ;;  %v904_v49 = vadd.f32 %v888_v37, %v3048_v63  ;;  %v889_v50 = vmul.f32 %v873_v38, %v3058_v19  ;;  %v959_v52 = vmul.f32 %v943_v1, %v3004_v11  ;;  %v944_v53 = vadd.f32 1.0, %v2586_v35 }
 0x177   : > { %v922_v55 = vmul.f32 0.7978846, %v906_v41  ;;  %v907_v51 = vadd.f32 %v891_v42, %v3053_v10  ;;  %v972_v56 = vpack.c.bf16 %v957_v43, %v956_v39  ;;  %v945_v58 = vadd.f32 1.0, %v2590_v45 }
 0x178   : > { %v920_v60 = vmul.f32 0.7978846, %v904_v49  ;;  %v905_v61 = vadd.f32 %v889_v50, %v3058_v19  ;;  %v973_v46 = vpack.c.bf16 %v959_v52, %v958_v44  ;;  %v960_v16 = vmul.f32 %v944_v53, %v3008_v17  ;;  %v2561_v50 = vld [vmem:[%s2899_s11 + $0x60] sm:$0xff]   ;;  %v2562_v52 = vld [vmem:[%s2899_s11 + $0x68] sm:$0xff]   ;;  %v2563_v53 = vld [vmem:[%s2899_s11 + $0x70] sm:$0xff]  }
 0x179   : > { %2599 = vtanh.f32 %v922_v55  ;;  %v923_v48 = vmul.f32 0.7978846, %v907_v51  ;;  %2328 = vmatprep.mubr.msk.bf16.mxu1 %vm992_vm2, %v972_v56  ;;  %v961_v54 = vmul.f32 %v945_v58, %v3018_v27  ;;  %v946_v62 = vadd.f32 1.0, %v2584_v30  ;;  %v2564_v55 = vld [vmem:[%s2899_s11 + $0x78] sm:$0xff]   ;;  %v2566_v51 = vld [vmem:[%s2899_s11 + $0x40] sm:$0xff]   ;;  %v2570_v58 = vld [vmem:[%s2899_s11 + $0x68] sm:$0xff]  }
 0x17a   : > { %2601 = vtanh.f32 %v920_v60  ;;  %v921_v11 = vmul.f32 0.7978846, %v905_v61  ;;  %2329 = vmatmul.mubr.msk.bf16.vlgmr.msra.gmra.mrb[0].mxu1 %vm992_vm2, %v973_v46  ;;  %v835_v0 = vmul.f32 0.5, %v2997_v57  ;;  %v947_v1 = vadd.f32 1.0, %v2588_v40  ;;  %v2568_v56 = vld [vmem:[%s2899_s11 + $0x58] sm:$0xff]   ;;  %v2571_v60 = vld [vmem:[%s2899_s11 + $0x70] sm:$0xff]  }
 0x17b   : > { %v2592_v3 = vpop.eup %2591  ;;  %2603 = vtanh.f32 %v923_v48  ;;  %2345 = vmatpush3.bf16.msra.mxu1 %v2907_v2  ;;  %v974_v5 = vpack.c.bf16 %v961_v54, %v960_v16  ;;  %v962_v7 = vmul.f32 %v946_v62, %v3036_v47  ;;  %v838_v18 = vmul.f32 0.5, %v3013_v20  ;;  %v2572_v61 = vld [vmem:[%s2899_s11 + $0x78] sm:$0xff]   ;;  %v2573_v46 = vld [vmem:[%s2899_s11 + $0x80] sm:$0xff]   ;;  %v2574_v16 = vld [vmem:[%s2899_s11 + $0x88] sm:$0xff]  }
 0x17c   : > { %v2594_v17 = vpop.eup %2593  ;;  %2605 = vtanh.f32 %v921_v11  ;;  %v963_v8 = vmul.f32 %v947_v1, %v835_v0  ;;  %v950_v12 = vadd.f32 1.0, %v2592_v3  ;;  %2484 = vmatprep.subr.msk.bf16.mxu1 %vm391_vm0, %v2915_v4  ;;  %v839_v2 = vmul.f32 0.5, %v3023_v31  ;;  %v3149_v48 = vld [vmem:[%s3424_s4] ss:$0 sm:$0xff]  ;;  %v1116_v62 = vld [vmem:[%s2888_s13 + $0x10] sm:$0xff] }
 0x17d   : > { %v2596_v27 = vpop.eup %2595  ;;  %2332 = vmatprep.mubr.msk.bf16.mxu1 %vm992_vm2, %v974_v5  ;;  %v948_v13 = vadd.f32 1.0, %v2594_v17  ;;  %v836_v22 = vmul.f32 0.5, %v3016_v25  ;;  %v837_v47 = vmul.f32 0.5, %v3027_v36  ;;  %v842_v36 = vmul.f32 0.5, %v3043_v59  ;;  %v1114_v1 = vld [vmem:[%s2888_s13] sm:$0xff]  ;;  %v1117_v17 = vld [vmem:[%s2888_s13 + $0x18] sm:$0xff] }
 0x17e   : > { %v2598_v57 = vpop.eup %2597  ;;  %v975_v15 = vpack.c.bf16 %v963_v8, %v962_v7  ;;  %v951_v21 = vadd.f32 1.0, %v2596_v27  ;;  %v966_v26 = vmul.f32 %v950_v12, %v838_v18  ;;  %v843_v37 = vmul.f32 0.5, %v3053_v10  ;;  %v2558_v10 = vld [vmem:[%s2899_s11 + $0x48] sm:$0xff]  }
 0x17f   : > { %v949_v23 = vadd.f32 1.0, %v2598_v57  ;;  %v964_v29 = vmul.f32 %v948_v13, %v836_v22  ;;  %v840_v39 = vmul.f32 0.5, %v3048_v63  ;;  %v841_v40 = vmul.f32 0.5, %v3058_v19  ;;  %v2559_v63 = vld [vmem:[%s2899_s11 + $0x50] sm:$0xff]   ;;  %v2560_v19 = vld [vmem:[%s2899_s11 + $0x58] sm:$0xff]   ;;  %v1115_v27 = vld [vmem:[%s2888_s13 + $0x8] sm:$0xff] }
 0x180   : > { %v967_v28 = vmul.f32 %v951_v21, %v839_v2  ;;  %v1120_v21 = vld [vmem:[%s2888_s13 + $0x30] sm:$0xff] }
 0x181   : > { %v965_v4 = vmul.f32 %v949_v23, %v837_v47  ;;  %v1118_v23 = vld [vmem:[%s2888_s13 + $0x20] sm:$0xff] }
 0x182   : > { %2333 = vmatmul.mubr.msk.bf16.gmra.mrb[4].mxu1 %vm992_vm2, %v975_v15  ;;  %v977_v30 = vpack.c.bf16 %v967_v28, %v966_v26 }
 0x183   : > { %v2600_v32 = vpop.eup %2599  ;;  %v976_v33 = vpack.c.bf16 %v965_v4, %v964_v29  ;;  %v1121_v29 = vld [vmem:[%s2888_s13 + $0x38] sm:$0xff] }
 0x184   : > { %v2602_v34 = vpop.eup %2601  ;;  %v954_v35 = vadd.f32 1.0, %v2600_v32 }
 0x185   : > { %v2604_v20 = vpop.eup %2603  ;;  %2336 = vmatprep.mubr.msk.bf16.mxu1 %vm992_vm2, %v976_v33  ;;  %v952_v31 = vadd.f32 1.0, %v2602_v34  ;;  %v1119_v33 = vld [vmem:[%s2888_s13 + $0x28] sm:$0xff] }
 0x186   : > { %v2606_v25 = vpop.eup %2605  ;;  %v955_v38 = vadd.f32 1.0, %v2604_v20  ;;  %v970_v42 = vmul.f32 %v954_v35, %v842_v36  ;;  %v1124_v36 = vld [vmem:[%s2888_s13 + $0x50] sm:$0xff] }
 0x187   : > { %v953_v41 = vadd.f32 1.0, %v2606_v25  ;;  %v968_v44 = vmul.f32 %v952_v31, %v840_v39  ;;  %v1122_v39 = vld [vmem:[%s2888_s13 + $0x40] sm:$0xff] }
 0x188   : > { %v971_v43 = vmul.f32 %v955_v38, %v843_v37 }
 0x189   : > { %v969_v45 = vmul.f32 %v953_v41, %v841_v40 }
 0x18a   : > { %2337 = vmatmul.mubr.msk.bf16.gmra.mrb[8].mxu1 %vm992_vm2, %v977_v30  ;;  %v979_v49 = vpack.c.bf16 %v971_v43, %v970_v42  ;;  %v1125_v42 = vld [vmem:[%s2888_s13 + $0x58] sm:$0xff] }
 0x18b   : > { %v978_v59 = vpack.c.bf16 %v969_v45, %v968_v44 }
 0x18d   : > { %2340 = vmatprep.mubr.msk.bf16.mxu1 %vm992_vm2, %v978_v59 }
 0x192   : > { %2341 = vmatmul.mubr.msk.bf16.gmra.mrb[12].mxu1 %vm992_vm2, %v979_v49  ;;  %v1123_v49 = vld [vmem:[%s2888_s13 + $0x48] sm:$0xff] }
 0x193   : > { %2346 = vmatprep.mubr.msk.bf16.mxu1 %vm366_vm1, %v2558_v10 }
 0x19a   : > { %2347 = vmatmul.mubr.msk.bf16.vlgmr.msra.gmra.mrb[16].mxu1 %vm366_vm1, %v2559_v63 }
 0x19b   : > { %2363 = vmatpush3.bf16.msra.mxu1 %v2922_v6  ;;  %2350 = vmatprep.mubr.msk.bf16.mxu1 %vm366_vm1, %v2560_v19  ;;  %v2565_v6 = vld [vmem:[%s2899_s11 + $0x80] sm:$0xff]  }
 0x19c   : > { %2485 = vmatprep.subr.msk.bf16.mxu1 %vm391_vm0, %v2932_v9  ;;  %v2567_v9 = vld [vmem:[%s2899_s11 + $0x50] sm:$0xff]  }
 0x1a2   : > { %2351 = vmatmul.mubr.msk.bf16.gmra.mrb[20].mxu1 %vm366_vm1, %v2561_v50 }
 0x1a3   : > { %2354 = vmatprep.mubr.msk.bf16.mxu1 %vm366_vm1, %v2562_v52 }
 0x1aa   : > { %2355 = vmatmul.mubr.msk.bf16.gmra.mrb[24].mxu1 %vm366_vm1, %v2563_v53 }
 0x1ab   : > { %2358 = vmatprep.mubr.msk.bf16.mxu1 %vm366_vm1, %v2564_v55 }
 0x1b2   : > { %2359 = vmatmul.mubr.msk.bf16.gmra.mrb[28].mxu1 %vm366_vm1, %v2565_v6  ;;  %v1126_v6 = vld [vmem:[%s2888_s13 + $0x60] sm:$0xff] }
 0x1b3   : > { %2364 = vmatprep.mubr.msk.bf16.mxu1 %vm366_vm1, %v2566_v51 }
 0x1ba   : > { %2365 = vmatmul.mubr.msk.bf16.vlgmr.msra.gmra.mrb[16].mxu1 %vm366_vm1, %v2558_v10 }
 0x1bb   : > { %2381 = vmatpush3.bf16.msra.mxu1 %v2948_v14  ;;  %2368 = vmatprep.mubr.msk.bf16.mxu1 %vm366_vm1, %v2559_v63  ;;  %v2569_v14 = vld [vmem:[%s2899_s11 + $0x60] sm:$0xff]   ;;  %s3161_s11 = scalar_lea.vmem [#allocation5], %s2082_s7  ;;  %s2199_s7 = sshll.u32 %s2799_s25, 12 }
 0x1bc   : > { %s1990_s15 = sshll.u32 %s3161_s11, 4  ;;  %s3371_s26 = scalar_lea.hbm %s3426_s6, %s2199_s7  ;;  %s3373_s15 = int_to_ptr.vmem [resolvable:$true] %s1990_s15 }
 0x1bd   : > { %s1977_s25 = scalar_lea.sflag [#allocation4], %s2882_s29  ;;  %p2676_p10 = scmp.lt.s32.totalorder %s3373_s15, %s2674_s12 }
 0x1c2   : > { %2369 = vmatmul.mubr.msk.bf16.gmra.mrb[20].mxu1 %vm366_vm1, %v2560_v19 }
 0x1c3   : > { %2372 = vmatprep.mubr.msk.bf16.mxu1 %vm366_vm1, %v2561_v50 }
 0x1ca   : > { %2373 = vmatmul.mubr.msk.bf16.gmra.mrb[24].mxu1 %vm366_vm1, %v2562_v52  ;;  %v1128_v52 = vld [vmem:[%s2888_s13 + $0x70] sm:$0xff] }
 0x1cb   : > { %2376 = vmatprep.mubr.msk.bf16.mxu1 %vm366_vm1, %v2563_v53 }
 0x1d2   : > { %2377 = vmatmul.mubr.msk.bf16.gmra.mrb[28].mxu1 %vm366_vm1, %v2564_v55 }
 0x1d3   : > { %2382 = vmatprep.mubr.msk.bf16.mxu1 %vm366_vm1, %v2567_v9 }
 0x1da   : > { %2383 = vmatmul.mubr.msk.bf16.vlgmr.msra.gmra.mrb[16].mxu1 %vm366_vm1, %v2568_v56  ;;  %v1129_v56 = vld [vmem:[%s2888_s13 + $0x78] sm:$0xff] }
 0x1db   : > { %2386 = vmatprep.mubr.msk.bf16.mxu1 %vm366_vm1, %v2569_v14 }
 0x1e2   : > { %2387 = vmatmul.mubr.msk.bf16.gmra.mrb[20].mxu1 %vm366_vm1, %v2570_v58 }
 0x1e3   : > { %2390 = vmatprep.mubr.msk.bf16.mxu1 %vm366_vm1, %v2571_v60 }
 0x1ea   : > { %2391 = vmatmul.mubr.msk.bf16.gmra.mrb[24].mxu1 %vm366_vm1, %v2572_v61  ;;  %v1127_v61 = vld [vmem:[%s2888_s13 + $0x68] sm:$0xff] }
 0x1eb   : > { %2394 = vmatprep.mubr.msk.bf16.mxu1 %vm366_vm1, %v2573_v46 }
 0x1f2   : > { %2395 = vmatmul.mubr.msk.bf16.gmra.mrb[28].mxu1 %vm366_vm1, %v2574_v16 }
 0x24d   : > { %v2330_v54 = vpop.f32.mrb[0].mxu1 }
 0x24e   : > { %v1060_v11 = vadd.f32 %v2330_v54, %v3149_v48  ;;  %v1051_v0 = vpop.f32.mrb[1].mxu1 }
 0x24f   : > { %v1052_v3 = vadd.f32 %v3149_v48, %v1051_v0  ;;  %v2331_v5 = vpop.f32.mrb[2].mxu1 }
 0x250   : > { %v1132_v7 = vadd.f32 %v1116_v62, %v1060_v11  ;;  %v1063_v8 = vadd.f32 %v2331_v5, %v3149_v48  ;;  %v1054_v12 = vpop.f32.mrb[3].mxu1 }
 0x251   : > { %v1130_v13 = vadd.f32 %v1114_v1, %v1052_v3  ;;  %v1055_v57 = vadd.f32 %v3149_v48, %v1054_v12 }
 0x252   : > { %1148 = vst [vmem:[%s3161_s11 + $0x10] sm:$0xff] %v1132_v7  ;;  %v1133_v15 = vadd.f32 %v1117_v17, %v1063_v8 }
 0x253   : > { %1146 = vst [vmem:[%s3161_s11] sm:$0xff] %v1130_v13  ;;  %v1131_v18 = vadd.f32 %v1115_v27, %v1055_v57 }
 0x254   : > { %1149 = vst [vmem:[%s3161_s11 + $0x18] sm:$0xff] %v1133_v15 }
 0x255   : > { %1147 = vst [vmem:[%s3161_s11 + $0x8] sm:$0xff] %v1131_v18  ;;  %v2334_v2 = vpop.f32.mrb[4].mxu1 }
 0x256   : > { %v1076_v22 = vadd.f32 %v2334_v2, %v3149_v48  ;;  %v1067_v47 = vpop.f32.mrb[5].mxu1 }
 0x257   : > { %v1068_v26 = vadd.f32 %v3149_v48, %v1067_v47  ;;  %v2335_v28 = vpop.f32.mrb[6].mxu1 }
 0x258   : > { %v1136_v4 = vadd.f32 %v1120_v21, %v1076_v22  ;;  %v1079_v30 = vadd.f32 %v2335_v28, %v3149_v48  ;;  %v1070_v32 = vpop.f32.mrb[7].mxu1 }
 0x259   : > { %v1134_v34 = vadd.f32 %v1118_v23, %v1068_v26  ;;  %v1071_v35 = vadd.f32 %v3149_v48, %v1070_v32 }
 0x25a   : > { %1152 = vst [vmem:[%s3161_s11 + $0x30] sm:$0xff] %v1136_v4  ;;  %v1137_v20 = vadd.f32 %v1121_v29, %v1079_v30 }
 0x25b   : > { %1150 = vst [vmem:[%s3161_s11 + $0x20] sm:$0xff] %v1134_v34  ;;  %v1135_v31 = vadd.f32 %v1119_v33, %v1071_v35 }
 0x25c   : > { %1153 = vst [vmem:[%s3161_s11 + $0x38] sm:$0xff] %v1137_v20 }
 0x25d   : > { %1151 = vst [vmem:[%s3161_s11 + $0x28] sm:$0xff] %v1135_v31  ;;  %v2338_v25 = vpop.f32.mrb[8].mxu1 }
 0x25e   : > { %v1092_v37 = vadd.f32 %v2338_v25, %v3149_v48  ;;  %v1083_v38 = vpop.f32.mrb[9].mxu1 }
 0x25f   : > { %v1084_v40 = vadd.f32 %v3149_v48, %v1083_v38  ;;  %v2339_v41 = vpop.f32.mrb[10].mxu1 }
 0x260   : > { %v1140_v43 = vadd.f32 %v1124_v36, %v1092_v37  ;;  %v1095_v44 = vadd.f32 %v2339_v41, %v3149_v48  ;;  %v1086_v45 = vpop.f32.mrb[11].mxu1 }
 0x261   : > { %v1138_v59 = vadd.f32 %v1122_v39, %v1084_v40  ;;  %v1087_v10 = vadd.f32 %v3149_v48, %v1086_v45 }
 0x262   : > { %1156 = vst [vmem:[%s3161_s11 + $0x50] sm:$0xff] %v1140_v43  ;;  %v1141_v63 = vadd.f32 %v1125_v42, %v1095_v44 }
 0x263   : > { %1154 = vst [vmem:[%s3161_s11 + $0x40] sm:$0xff] %v1138_v59  ;;  %v1139_v19 = vadd.f32 %v1123_v49, %v1087_v10 }
 0x264   : > { %1157 = vst [vmem:[%s3161_s11 + $0x58] sm:$0xff] %v1141_v63 }
 0x265   : > { %1155 = vst [vmem:[%s3161_s11 + $0x48] sm:$0xff] %v1139_v19  ;;  %v2342_v50 = vpop.f32.mrb[12].mxu1 }
 0x266   : > { %v1108_v53 = vadd.f32 %v2342_v50, %v3149_v48  ;;  %v1099_v55 = vpop.f32.mrb[13].mxu1 }
 0x267   : > { %v1100_v51 = vadd.f32 %v3149_v48, %v1099_v55  ;;  %v2343_v9 = vpop.f32.mrb[14].mxu1 }
 0x268   : > { %v1144_v14 = vadd.f32 %v1128_v52, %v1108_v53  ;;  %v1111_v58 = vadd.f32 %v2343_v9, %v3149_v48  ;;  %v1102_v60 = vpop.f32.mrb[15].mxu1 }
 0x269   : > { %v1142_v46 = vadd.f32 %v1126_v6, %v1100_v51  ;;  %v1103_v16 = vadd.f32 %v3149_v48, %v1102_v60 }
 0x26a   : > { %1160 = vst [vmem:[%s3161_s11 + $0x70] sm:$0xff] %v1144_v14  ;;  %v1145_v54 = vadd.f32 %v1129_v56, %v1111_v58 }
 0x26b   : > { %1158 = vst [vmem:[%s3161_s11 + $0x60] sm:$0xff] %v1142_v46  ;;  %v1143_v62 = vadd.f32 %v1127_v61, %v1103_v16 }
 0x26c   : > { %1161 = vst [vmem:[%s3161_s11 + $0x78] sm:$0xff] %v1145_v54 }
 0x26d   : > { %1159 = vst [vmem:[%s3161_s11 + $0x68] sm:$0xff] %v1143_v62 }
 0x2ad   : > { %v2384_v11 = vpop.f32.mrb[16].mxu1 }
 0x2ae   : > { %v1641_v0 = vadd.f32 %v2384_v11, %v2981_v24  ;;  %v1560_v1 = vpop.f32.mrb[17].mxu1 }
 0x2af   : > { %v1639_v3 = vadd.f32 %v2981_v24, %v1560_v1  ;;  %v2385_v5 = vpop.f32.mrb[18].mxu1 }
 0x2b0   : > { %v1673_v17 = vmul.f32 0.044715, %v1641_v0  ;;  %v1642_v7 = vadd.f32 %v2385_v5, %v2981_v24  ;;  %v1563_v8 = vpop.f32.mrb[19].mxu1  ;;  %v3207_v26 = vmul.f32 0.5, %v1641_v0 }
 0x2b1   : > { %v1671_v12 = vmul.f32 0.044715, %v1639_v3  ;;  %v1640_v27 = vadd.f32 %v2981_v24, %v1563_v8  ;;  %v3213_v20 = vmul.f32 0.5, %v1639_v3 }
 0x2b2   : > { %v1689_v13 = vmul.f32 %v1673_v17, %v1641_v0  ;;  %v1674_v57 = vmul.f32 0.044715, %v1642_v7  ;;  %v3222_v63 = vmul.f32 0.5, %v1642_v7 }
 0x2b3   : > { %v1687_v15 = vmul.f32 %v1671_v12, %v1639_v3  ;;  %v1672_v18 = vmul.f32 0.044715, %v1640_v27  ;;  %v3226_v6 = vmul.f32 0.5, %v1640_v27 }
 0x2b4   : > { %v1705_v2 = vmul.f32 %v1689_v13, %v1641_v0  ;;  %v1690_v21 = vmul.f32 %v1674_v57, %v1642_v7 }
 0x2b5   : > { %v1703_v22 = vmul.f32 %v1687_v15, %v1639_v3  ;;  %v1688_v47 = vmul.f32 %v1672_v18, %v1640_v27  ;;  %v2388_v23 = vpop.f32.mrb[20].mxu1 }
 0x2b6   : > { %v1721_v28 = vadd.f32 %v1705_v2, %v1641_v0  ;;  %v1706_v29 = vmul.f32 %v1690_v21, %v1642_v7  ;;  %v3210_v4 = vadd.f32 %v2388_v23, %v2981_v24  ;;  %v1576_v30 = vpop.f32.mrb[21].mxu1 }
 0x2b7   : > { %v1719_v32 = vadd.f32 %v1703_v22, %v1639_v3  ;;  %v1704_v33 = vmul.f32 %v1688_v47, %v1640_v27  ;;  %v1643_v34 = vadd.f32 %v2981_v24, %v1576_v30  ;;  %v2389_v35 = vpop.f32.mrb[22].mxu1 }
 0x2b8   : > { %v1737_v31 = vmul.f32 0.7978846, %v1721_v28  ;;  %v1722_v25 = vadd.f32 %v1706_v29, %v1642_v7  ;;  %v1677_v36 = vmul.f32 0.044715, %v3210_v4  ;;  %v3217_v37 = vadd.f32 %v2389_v35, %v2981_v24  ;;  %v1579_v38 = vpop.f32.mrb[23].mxu1 }
 0x2b9   : > { %v1735_v39 = vmul.f32 0.7978846, %v1719_v32  ;;  %v1720_v40 = vadd.f32 %v1704_v33, %v1640_v27  ;;  %v1675_v41 = vmul.f32 0.044715, %v1643_v34  ;;  %v1644_v42 = vadd.f32 %v2981_v24, %v1579_v38 }
 0x2ba   : > { %2607 = vtanh.f32 %v1737_v31  ;;  %v1738_v43 = vmul.f32 0.7978846, %v1722_v25  ;;  %v1693_v44 = vmul.f32 %v1677_v36, %v3210_v4  ;;  %v1678_v45 = vmul.f32 0.044715, %v3217_v37 }
 0x2bb   : > { %2609 = vtanh.f32 %v1735_v39  ;;  %v1736_v49 = vmul.f32 0.7978846, %v1720_v40  ;;  %v1691_v59 = vmul.f32 %v1675_v41, %v1643_v34  ;;  %v1676_v10 = vmul.f32 0.044715, %v1644_v42 }
 0x2bc   : > { %2611 = vtanh.f32 %v1738_v43  ;;  %v1709_v19 = vmul.f32 %v1693_v44, %v3210_v4  ;;  %v1694_v50 = vmul.f32 %v1678_v45, %v3217_v37  ;;  %v3228_v51 = vmul.f32 0.5, %v1643_v34 }
 0x2bd   : > { %v1707_v52 = vmul.f32 %v1691_v59, %v1643_v34  ;;  %v1692_v53 = vmul.f32 %v1676_v10, %v1644_v42  ;;  %v2392_v55 = vpop.f32.mrb[24].mxu1  ;;  %2613 = vtanh.f32 %v1736_v49  ;;  %v3238_v54 = vmul.f32 0.5, %v1644_v42 }
 0x2be   : > { %v1725_v9 = vadd.f32 %v1709_v19, %v3210_v4  ;;  %v1710_v56 = vmul.f32 %v1694_v50, %v3217_v37  ;;  %v3233_v14 = vadd.f32 %v2392_v55, %v2981_v24  ;;  %v1592_v58 = vpop.f32.mrb[25].mxu1  ;;  %v3256_v47 = vmul.f32 0.5, %v3210_v4 }
 0x2bf   : > { %v1723_v60 = vadd.f32 %v1707_v52, %v1643_v34  ;;  %v1708_v61 = vmul.f32 %v1692_v53, %v1644_v42  ;;  %v3236_v46 = vadd.f32 %v2981_v24, %v1592_v58  ;;  %v2393_v16 = vpop.f32.mrb[26].mxu1 }
 0x2c0   : > { %v1741_v62 = vmul.f32 0.7978846, %v1725_v9  ;;  %v1726_v11 = vadd.f32 %v1710_v56, %v3217_v37  ;;  %v1681_v0 = vmul.f32 0.044715, %v3233_v14  ;;  %v3243_v1 = vadd.f32 %v2393_v16, %v2981_v24  ;;  %v1595_v3 = vpop.f32.mrb[27].mxu1 }
 0x2c1   : > { %v1739_v5 = vmul.f32 0.7978846, %v1723_v60  ;;  %v1724_v17 = vadd.f32 %v1708_v61, %v1644_v42  ;;  %v1679_v7 = vmul.f32 0.044715, %v3236_v46  ;;  %v3247_v8 = vadd.f32 %v2981_v24, %v1595_v3 }
 0x2c2   : > { %2615 = vtanh.f32 %v1741_v62  ;;  %v1742_v12 = vmul.f32 0.7978846, %v1726_v11  ;;  %v1697_v27 = vmul.f32 %v1681_v0, %v3233_v14  ;;  %v1682_v13 = vmul.f32 0.044715, %v3243_v1 }
 0x2c3   : > { %2617 = vtanh.f32 %v1739_v5  ;;  %v1740_v57 = vmul.f32 0.7978846, %v1724_v17  ;;  %v1695_v15 = vmul.f32 %v1679_v7, %v3236_v46  ;;  %v1680_v18 = vmul.f32 0.044715, %v3247_v8 }
 0x2c4   : > { %v2608_v2 = vpop.eup %2607  ;;  %2619 = vtanh.f32 %v1742_v12  ;;  %v1713_v21 = vmul.f32 %v1697_v27, %v3233_v14  ;;  %v1698_v22 = vmul.f32 %v1682_v13, %v3243_v1 }
 0x2c5   : > { %v2610_v23 = vpop.eup %2609  ;;  %v1769_v28 = vadd.f32 1.0, %v2608_v2  ;;  %2621 = vtanh.f32 %v1740_v57  ;;  %v1711_v29 = vmul.f32 %v1695_v15, %v3236_v46  ;;  %v1696_v30 = vmul.f32 %v1680_v18, %v3247_v8  ;;  %v2396_v32 = vpop.f32.mrb[28].mxu1 }
 0x2c6   : > { %v2612_v33 = vpop.eup %2611  ;;  %v1729_v34 = vadd.f32 %v1713_v21, %v3233_v14  ;;  %v1714_v35 = vmul.f32 %v1698_v22, %v3243_v1  ;;  %v3263_v31 = vadd.f32 %v2396_v32, %v2981_v24  ;;  %v1608_v25 = vpop.f32.mrb[29].mxu1  ;;  %v1767_v36 = vadd.f32 1.0, %v2610_v23 }
 0x2c7   : > { %v3266_v4 = vmul.f32 %v1769_v28, %v3207_v26  ;;  %v1770_v38 = vadd.f32 1.0, %v2612_v33  ;;  %v1727_v39 = vadd.f32 %v1711_v29, %v3236_v46  ;;  %v1712_v40 = vmul.f32 %v1696_v30, %v3247_v8  ;;  %v2397_v41 = vpop.f32.mrb[30].mxu1  ;;  %v2614_v42 = vpop.eup %2613 }
 0x2c8   : > { %v1745_v43 = vmul.f32 0.7978846, %v1729_v34  ;;  %v1730_v44 = vadd.f32 %v1714_v35, %v3243_v1  ;;  %v1685_v45 = vmul.f32 0.044715, %v3263_v31  ;;  %v3273_v49 = vadd.f32 %v2981_v24, %v1608_v25  ;;  %v1611_v59 = vpop.f32.mrb[31].mxu1 }
 0x2c9   : > { %v1786_v10 = vmul.f32 %v1770_v38, %v3222_v63  ;;  %v1743_v26 = vmul.f32 0.7978846, %v1727_v39  ;;  %v1728_v19 = vadd.f32 %v1712_v40, %v3247_v8  ;;  %v3278_v50 = vadd.f32 %v2397_v41, %v2981_v24 }
 0x2ca   : > { %2623 = vtanh.f32 %v1745_v43  ;;  %v1746_v52 = vmul.f32 0.7978846, %v1730_v44  ;;  %v1701_v53 = vmul.f32 %v1685_v45, %v3263_v31  ;;  %v1683_v55 = vmul.f32 0.044715, %v3273_v49 }
 0x2cb   : > { %v1800_v9 = vpack.c.bf16 %v1786_v10, %v3266_v4  ;;  %2625 = vtanh.f32 %v1743_v26  ;;  %v1744_v56 = vmul.f32 0.7978846, %v1728_v19  ;;  %v1686_v58 = vmul.f32 0.044715, %v3278_v50 }
 0x2cc   : > { %v2616_v60 = vpop.eup %2615  ;;  %2627 = vtanh.f32 %v1746_v52  ;;  %v1717_v63 = vmul.f32 %v1701_v53, %v3263_v31  ;;  %v1699_v61 = vmul.f32 %v1683_v55, %v3273_v49  ;;  %v3287_v16 = vadd.f32 %v2981_v24, %v1611_v59 }
 0x2cd   : > { %v2618_v62 = vpop.eup %2617  ;;  %2629 = vtanh.f32 %v1744_v56  ;;  %v1702_v11 = vmul.f32 %v1686_v58, %v3278_v50  ;;  %v1768_v0 = vadd.f32 1.0, %v2614_v42  ;;  %v1783_v3 = vmul.f32 %v1767_v36, %v3213_v20 }
 0x2ce   : > { %v2620_v5 = vpop.eup %2619  ;;  %v1733_v17 = vadd.f32 %v1717_v63, %v3263_v31  ;;  %v1715_v7 = vmul.f32 %v1699_v61, %v3273_v49  ;;  %v1684_v12 = vmul.f32 0.044715, %v3287_v16  ;;  %v1771_v27 = vadd.f32 1.0, %v2618_v62 }
 0x2cf   : > { %v2622_v13 = vpop.eup %2621  ;;  %v1718_v57 = vmul.f32 %v1702_v11, %v3278_v50  ;;  %v1784_v24 = vmul.f32 %v1768_v0, %v3226_v6  ;;  %v1773_v15 = vadd.f32 1.0, %v2616_v60  ;;  %v1774_v18 = vadd.f32 1.0, %v2620_v5 }
 0x2d0   : > { %v1749_v2 = vmul.f32 0.7978846, %v1733_v17  ;;  %v1731_v21 = vadd.f32 %v1715_v7, %v3273_v49  ;;  %v1700_v20 = vmul.f32 %v1684_v12, %v3287_v16  ;;  %v1772_v22 = vadd.f32 1.0, %v2622_v13  ;;  %v1928_v13 = vld [vmem:[%s2888_s13 + $0x80] sm:$0xff] }
 0x2d1   : > { %v1734_v23 = vadd.f32 %v1718_v57, %v3278_v50  ;;  %v1799_v28 = vpack.c.bf16 %v1784_v24, %v1783_v3  ;;  %v1787_v29 = vmul.f32 %v1771_v27, %v3228_v51  ;;  %v1662_v30 = vmul.f32 0.5, %v3217_v37  ;;  %v1930_v27 = vld [vmem:[%s2888_s13 + $0x90] sm:$0xff] }
 0x2d2   : > { %2631 = vtanh.f32 %v1749_v2  ;;  %v1747_v32 = vmul.f32 0.7978846, %v1731_v21  ;;  %v1716_v33 = vmul.f32 %v1700_v20, %v3287_v16  ;;  %v1788_v6 = vmul.f32 %v1772_v22, %v3238_v54  ;;  %v1929_v20 = vld [vmem:[%s2888_s13 + $0x88] sm:$0xff] }
 0x2d3   : > { %v1750_v34 = vmul.f32 0.7978846, %v1734_v23  ;;  %2400 = vmatprep.mubr.msk.bf16.mxu0 %vm992_vm2, %v1799_v28  ;;  %v1789_v35 = vmul.f32 %v1773_v15, %v3256_v47  ;;  %v1790_v25 = vmul.f32 %v1774_v18, %v1662_v30  ;;  %v1665_v47 = vmul.f32 0.5, %v3233_v14  ;;  %v1931_v15 = vld [vmem:[%s2888_s13 + $0x98] sm:$0xff] }
 0x2d4   : > { %v2624_v36 = vpop.eup %2623  ;;  %2633 = vtanh.f32 %v1747_v32  ;;  %v1732_v4 = vadd.f32 %v1716_v33, %v3287_v16  ;;  %2401 = vmatmul.mubr.msk.bf16.vlgmr.msra.gmra.mrb[16].mxu0 %vm992_vm2, %v1800_v9  ;;  %v1801_v51 = vpack.c.bf16 %v1788_v6, %v1787_v29  ;;  %v1666_v43 = vmul.f32 0.5, %v3243_v1  ;;  %v1934_v32 = vld [vmem:[%s2888_s13 + $0xb0] sm:$0xff] }
 0x2d5   : > { %v2626_v37 = vpop.eup %2625  ;;  %2635 = vtanh.f32 %v1750_v34  ;;  %v1802_v38 = vpack.c.bf16 %v1790_v25, %v1789_v35  ;;  %v1777_v39 = vadd.f32 1.0, %v2624_v36  ;;  %v1663_v45 = vmul.f32 0.5, %v3236_v46  ;;  %v1932_v34 = vld [vmem:[%s2888_s13 + $0xa0] sm:$0xff]  ;;  %v1935_v36 = vld [vmem:[%s2888_s13 + $0xb8] sm:$0xff] }
 0x2d6   : > { %v2628_v40 = vpop.eup %2627  ;;  %v1748_v41 = vmul.f32 0.7978846, %v1732_v4  ;;  %2404 = vmatprep.mubr.msk.bf16.mxu0 %vm992_vm2, %v1801_v51  ;;  %v1775_v54 = vadd.f32 1.0, %v2626_v37  ;;  %v1664_v59 = vmul.f32 0.5, %v3247_v8  ;;  %v1669_v60 = vmul.f32 0.5, %v3263_v31 }
 0x2d7   : > { %v2630_v42 = vpop.eup %2629  ;;  %v1778_v44 = vadd.f32 1.0, %v2628_v40  ;;  %v1793_v26 = vmul.f32 %v1777_v39, %v1665_v47  ;;  %v1670_v46 = vmul.f32 0.5, %v3278_v50  ;;  %v1667_v0 = vmul.f32 0.5, %v3273_v49  ;;  %v1938_v47 = vld [vmem:[%s2888_s13 + $0xd0] sm:$0xff] }
 0x2d8   : > { %2637 = vtanh.f32 %v1748_v41  ;;  %v1776_v10 = vadd.f32 1.0, %v2630_v42  ;;  %v1791_v52 = vmul.f32 %v1775_v54, %v1663_v45  ;;  %v1668_v3 = vmul.f32 0.5, %v3287_v16  ;;  %v1936_v45 = vld [vmem:[%s2888_s13 + $0xc0] sm:$0xff] }
 0x2d9   : > { %v1794_v19 = vmul.f32 %v1778_v44, %v1666_v43 }
 0x2da   : > { %v1792_v53 = vmul.f32 %v1776_v10, %v1664_v59 }
 0x2db   : > { %v1804_v55 = vpack.c.bf16 %v1794_v19, %v1793_v26  ;;  %v1939_v26 = vld [vmem:[%s2888_s13 + $0xd8] sm:$0xff] }
 0x2dc   : > { %v2632_v9 = vpop.eup %2631  ;;  %2405 = vmatmul.mubr.msk.bf16.gmra.mrb[20].mxu0 %vm992_vm2, %v1802_v38  ;;  %v1803_v56 = vpack.c.bf16 %v1792_v53, %v1791_v52  ;;  %v1933_v38 = vld [vmem:[%s2888_s13 + $0xa8] sm:$0xff] }
 0x2dd   : > { %v1781_v14 = vadd.f32 1.0, %v2632_v9 }
 0x2de   : > { %v2634_v58 = vpop.eup %2633  ;;  %2408 = vmatprep.mubr.msk.bf16.mxu0 %vm992_vm2, %v1803_v56 }
 0x2df   : > { %v2636_v1 = vpop.eup %2635  ;;  %v1779_v63 = vadd.f32 1.0, %v2634_v58  ;;  %v1797_v62 = vmul.f32 %v1781_v14, %v1669_v60  ;;  %v1942_v60 = vld [vmem:[%s2888_s13 + $0xf0] sm:$0xff] }
 0x2e0   : > { %v1782_v8 = vadd.f32 1.0, %v2636_v1 }
 0x2e1   : > { %v1795_v7 = vmul.f32 %v1779_v63, %v1667_v0  ;;  %v1940_v63 = vld [vmem:[%s2888_s13 + $0xe0] sm:$0xff] }
 0x2e2   : > { %v2638_v61 = vpop.eup %2637  ;;  %v1798_v11 = vmul.f32 %v1782_v8, %v1670_v46 }
 0x2e3   : > { %v1780_v5 = vadd.f32 1.0, %v2638_v61 }
 0x2e4   : > { %2409 = vmatmul.mubr.msk.bf16.gmra.mrb[24].mxu0 %vm992_vm2, %v1804_v55  ;;  %v1806_v17 = vpack.c.bf16 %v1798_v11, %v1797_v62  ;;  %v1937_v55 = vld [vmem:[%s2888_s13 + $0xc8] sm:$0xff]  ;;  %v1943_v11 = vld [vmem:[%s2888_s13 + $0xf8] sm:$0xff] }
 0x2e5   : > { %v1796_v31 = vmul.f32 %v1780_v5, %v1668_v3 }
 0x2e7   : > { %v1805_v50 = vpack.c.bf16 %v1796_v31, %v1795_v7 }
 0x2e9   : > { %2412 = vmatprep.mubr.msk.bf16.mxu0 %vm992_vm2, %v1805_v50 }
 0x2ec   : > { %2413 = vmatmul.mubr.msk.bf16.gmra.mrb[28].mxu0 %vm992_vm2, %v1806_v17  ;;  %v1941_v17 = vld [vmem:[%s2888_s13 + $0xe8] sm:$0xff]  ;;  %s2669_s13 = scalar_lea.vmem %s3373_s15, 4096 }
 0x2ed   : > { %p2670_p6 = scmp.ne.s32.totalorder %s3373_s15, %s2669_s13  ;;  %p2677_p0 = scmp.lt.s32.totalorder %s2675_s16, %s2669_s13 }
 0x2ef   : > { %p2671_p13 = pnand %p2670_p6, %p3433_p12  ;;  %p2678_p2 = por %p2677_p0, %p2676_p10 }
 0x2f1   : > { %p2672_p8 = pneg %p2671_p13 }
 0x2f3   : > { %p2679_p4 = pnand %p2678_p2, %p2672_p8 }
 0x3a7   : > { %v2402_v12 = vpop.f32.mrb[16].mxu0 }
 0x3a8   : > { %v1874_v49 = vadd.f32 %v2402_v12, %v3149_v48  ;;  %v1865_v16 = vpop.f32.mrb[17].mxu0 }
 0x3a9   : > { %v1866_v57 = vadd.f32 %v3149_v48, %v1865_v16  ;;  %v2403_v24 = vpop.f32.mrb[18].mxu0 }
 0x3aa   : > { %v1946_v18 = vadd.f32 %v1930_v27, %v1874_v49  ;;  %v1877_v2 = vadd.f32 %v2403_v24, %v3149_v48  ;;  %v1868_v21 = vpop.f32.mrb[19].mxu0 }
 0x3ab   : > { %v1944_v22 = vadd.f32 %v1928_v13, %v1866_v57  ;;  %v1869_v23 = vadd.f32 %v3149_v48, %v1868_v21 }
 0x3ac   : > { %1962 = vst [vmem:[%s3161_s11 + $0x90] sm:$0xff] %v1946_v18  ;;  %v1947_v28 = vadd.f32 %v1931_v15, %v1877_v2 }
 0x3ad   : > { %1960 = vst [vmem:[%s3161_s11 + $0x80] sm:$0xff] %v1944_v22  ;;  %v1945_v29 = vadd.f32 %v1929_v20, %v1869_v23 }
 0x3ae   : > { %1963 = vst [vmem:[%s3161_s11 + $0x98] sm:$0xff] %v1947_v28 }
 0x3af   : > { %1961 = vst [vmem:[%s3161_s11 + $0x88] sm:$0xff] %v1945_v29  ;;  %v2406_v30 = vpop.f32.mrb[20].mxu0 }
 0x3b0   : > { %v1890_v33 = vadd.f32 %v2406_v30, %v3149_v48  ;;  %v1881_v6 = vpop.f32.mrb[21].mxu0 }
 0x3b1   : > { %v1882_v35 = vadd.f32 %v3149_v48, %v1881_v6  ;;  %v2407_v25 = vpop.f32.mrb[22].mxu0 }
 0x3b2   : > { %v1950_v4 = vadd.f32 %v1934_v32, %v1890_v33  ;;  %v1893_v51 = vadd.f32 %v2407_v25, %v3149_v48  ;;  %v1884_v37 = vpop.f32.mrb[23].mxu0 }
 0x3b3   : > { %v1948_v39 = vadd.f32 %v1932_v34, %v1882_v35  ;;  %v1885_v40 = vadd.f32 %v3149_v48, %v1884_v37 }
 0x3b4   : > { %1966 = vst [vmem:[%s3161_s11 + $0xb0] sm:$0xff] %v1950_v4  ;;  %v1951_v41 = vadd.f32 %v1935_v36, %v1893_v51 }
 0x3b5   : > { %1964 = vst [vmem:[%s3161_s11 + $0xa0] sm:$0xff] %v1948_v39  ;;  %v1949_v54 = vadd.f32 %v1933_v38, %v1885_v40 }
 0x3b6   : > { %1967 = vst [vmem:[%s3161_s11 + $0xb8] sm:$0xff] %v1951_v41 }
 0x3b7   : > { %1965 = vst [vmem:[%s3161_s11 + $0xa8] sm:$0xff] %v1949_v54  ;;  %v2410_v42 = vpop.f32.mrb[24].mxu0 }
 0x3b8   : > { %v1906_v43 = vadd.f32 %v2410_v42, %v3149_v48  ;;  %v1897_v44 = vpop.f32.mrb[25].mxu0 }
 0x3b9   : > { %v1898_v59 = vadd.f32 %v3149_v48, %v1897_v44  ;;  %v2411_v10 = vpop.f32.mrb[26].mxu0 }
 0x3ba   : > { %v1954_v19 = vadd.f32 %v1938_v47, %v1906_v43  ;;  %v1909_v52 = vadd.f32 %v2411_v10, %v3149_v48  ;;  %v1900_v53 = vpop.f32.mrb[27].mxu0 }
 0x3bb   : > { %v1952_v9 = vadd.f32 %v1936_v45, %v1898_v59  ;;  %v1901_v56 = vadd.f32 %v3149_v48, %v1900_v53 }
 0x3bc   : > { %1970 = vst [vmem:[%s3161_s11 + $0xd0] sm:$0xff] %v1954_v19  ;;  %v1955_v58 = vadd.f32 %v1939_v26, %v1909_v52 }
 0x3bd   : > { %1968 = vst [vmem:[%s3161_s11 + $0xc0] sm:$0xff] %v1952_v9  ;;  %v1953_v14 = vadd.f32 %v1937_v55, %v1901_v56 }
 0x3be   : > { %1971 = vst [vmem:[%s3161_s11 + $0xd8] sm:$0xff] %v1955_v58 }
 0x3bf   : > { %1969 = vst [vmem:[%s3161_s11 + $0xc8] sm:$0xff] %v1953_v14  ;;  %v2414_v1 = vpop.f32.mrb[28].mxu0 }
 0x3c0   : > { %v1922_v46 = vadd.f32 %v2414_v1, %v3149_v48  ;;  %v1913_v8 = vpop.f32.mrb[29].mxu0 }
 0x3c1   : > { %v1914_v61 = vadd.f32 %v3149_v48, %v1913_v8  ;;  %v2415_v62 = vpop.f32.mrb[30].mxu0 }
 0x3c2   : > { %v1958_v0 = vadd.f32 %v1942_v60, %v1922_v46  ;;  %v1925_v3 = vadd.f32 %v2415_v62, %v3149_v48  ;;  %v1916_v5 = vpop.f32.mrb[31].mxu0 }
 0x3c3   : > { %v1956_v7 = vadd.f32 %v1940_v63, %v1914_v61  ;;  %v1917_v31 = vadd.f32 %v3149_v48, %v1916_v5 }
 0x3c4   : > { %1974 = vst [vmem:[%s3161_s11 + $0xf0] sm:$0xff] %v1958_v0  ;;  %v1959_v50 = vadd.f32 %v1943_v11, %v1925_v3 }
 0x3c5   : > { %1972 = vst [vmem:[%s3161_s11 + $0xe0] sm:$0xff] %v1956_v7  ;;  %v1957_v12 = vadd.f32 %v1941_v17, %v1917_v31 }
 0x3c6   : > { %1975 = vst [vmem:[%s3161_s11 + $0xf8] sm:$0xff] %v1959_v50 }
 0x3c7   : > { %1973 = vst [vmem:[%s3161_s11 + $0xe8] sm:$0xff] %v1957_v12 }
 0x3c8   : > { %2682 = shalt.err (!%p2679_p4)
}
 0x3c9   : > { %s2683_s18 = scalar_lea.hbm %s3371_s26, 4096  ;;  %s2687_s14 = scalar_lea.hbm %s3426_s6, 8192 }
 0x3ca   : > { %p2684_p5 = scmp.ne.s32.totalorder %s3371_s26, %s2683_s18  ;;  %p2688_p1 = scmp.lt.u32.totalorder %s3371_s26, %s3426_s6 }
 0x3cb   : > { %p2689_p3 = scmp.lt.u32.totalorder %s2687_s14, %s2683_s18  ;;  %p2691_p6 = scmp.lt.u32.totalorder %s2683_s18, %s3371_s26 }
 0x3cc   : > { %p2685_p7 = pnand %p2684_p5, %p3433_p12 }
 0x3cd   : > { %p2690_p11 = por %p2689_p3, %p2688_p1 }
 0x3ce   : > { %p2686_p9 = pneg %p2685_p7 }
 0x3cf   : > { %p2692_p13 = por %p2691_p6, %p2690_p11 }
 0x3d1   : > { %p2693_p8 = pnand %p2692_p13, %p2686_p9 }
 0x3d3   : > { %2696 = shalt.err (!%p2693_p8)
}
 0x3d4   : > { %s2741_s8 = smov 128   ;;  %s2742_s17 = smov 8  }
 0x3d5   : > { %2489 = dma.vmem_to_hbm [thread:$0]  (%p3433_p12), %s3373_s15, 4096, %s3371_s26, %s1977_s25, %s2741_s8, %s2741_s8, %s2742_s17  }
 0x3d6 PF: > { %s2005_s13 = sand.u32 1, %s2723_s21   ;;  %p3434_p10 = scmp.ne.s32.totalorder %s3431_s10, 0 }
 0x3d7   : > { %p3435_p0 = scmp.ge.s32.totalorder %s2735_s24, 2  ;;  %s2006_s28 = scalar_lea.sflag [#allocation4], %s2005_s13 }
 0x3d9   : > { %p2496_p2 = pnand %p3435_p0, %p3434_p10 }
 0x3db   : > { %2718 = dma.done.wait (!%p2496_p2), %s2006_s28, 4096  }
 0x3dc   : > { %2720 = vsyncadd (!%p2496_p2), %s2006_s28, 4294963200  ;;  %p19_p4 = scmp.ge.s32.totalorder %s2803_s27, 4   ;;  %s3436_s21 = smov %s2727_s22 }
 0x3dd   : > { %s3437_s22 = smov %s2731_s23  ;;  %s3438_s23 = smov %s2815_s30 }
 0x3de   : > { %s3439_s24 = smov %s2803_s27  ;;  %21 = sbr.rel (!%p19_p4) target bundleno = 5 (0x5), region = 94 }
 0x3e5   :  { %2011 = vsyncpa [#allocation3], 1 }
 0x3e6   :  { %2013 = vsyncpa [#allocation3 + $0x1], 1 }
 0x3e7   :  { %2014 = vsyncpa [#allocation4], 1 }
 0x3e8   :  { %2016 = vsyncpa [#allocation4 + $0x1], 1 }

</bundles_post_ra>
